<compile_context>
chip_gen: v7x
topology: tpu7x:2x2x1
jax: 0.10.0
libtpu: 0.0.40
codegen_flags: <defaults>
</compile_context>

<pallas_src>
import jax
import jax.numpy as jnp
import numpy as np
from jax.experimental import pallas as pl
from jax.experimental.pallas import tpu as pltpu

_BN_EPS = 1e-5


# --------------------------------------------------------------------------------------
# small helpers (usable both inside kernels and in the pure-JAX reference)
# --------------------------------------------------------------------------------------
def _sign(x):
    # matches torch.sign exactly (sign(0) == 0)
    return jnp.where(x > 0, 1.0, jnp.where(x < 0, -1.0, 0.0)).astype(x.dtype)


def _binarize_weight(w):
    # RAConv2d weight binarization (forward): per-out-channel scaling * sign(w)
    scale = jnp.mean(jnp.abs(w), axis=(1, 2, 3), keepdims=True)
    return scale * _sign(w)


# --------------------------------------------------------------------------------------
# fused Pallas kernel (stage 1 + stage 2, Bt images folded into the lane axis per step)
# --------------------------------------------------------------------------------------
def _make_block_kernel(C, P, W, L):
    """Fused RANetBlockB kernel body for one (C, L) lane-batched tile (L = Bt*H*W)."""
    expand = P // C          # 1 (identity width) or 2 (expansion branch)

    def kernel(x_ref, w3_ref, wpw_ref, m_ref, pA_ref, pB_ref, o_ref):
        x = x_ref[...]                                  # (C, L) f32
        pA = pA_ref[...]                                # (C, 7): mb1, bn1_s, bn1_b, b0, slope, b1, mb2
        pB = pB_ref[...]                                # (P, 5): bn2_s, bn2_b, b0, slope, b1
        m = m_ref[...]                                  # (9, L) bf16 {0,1} border masks

        # ---- stage 1: move1 -> sign -> binary 3x3 conv as ONE im2col matmul ------------
        a1 = _sign(x + pA[:, 0:1])                      # (C, L) f32, values in {-1,0,+1}
        cols = []
        for dy in range(3):
            for dx in range(3):
                s = (dy - 1) * W + (dx - 1)             # flat source offset of this tap
                t = dy * 3 + dx
                # shifted[:, p] = a1[:, (p + s) mod L]  (XLU lane rotate); wrap-around and
                # out-of-image taps are zeroed by the precomputed mask row below.
                shifted = a1 if s == 0 else pltpu.roll(a1, shift=(-s) % L, axis=1)
                cols.append(shifted.astype(jnp.bfloat16) * m[t][None, :])
        im2col = jnp.concatenate(cols, axis=0)          # (9C, L) bf16, exact {-1,0,+1}

        # one wide-N MXU matmul; the |w| weight scale is folded into the BN scale pA[:,1]
        y1 = jnp.dot(w3_ref[...], im2col, preferred_element_type=jnp.float32)   # (C, L)
        y1 = y1 * pA[:, 1:2] + pA[:, 2:3]               # BatchNorm1 (folded, incl. |w| scale)
        y1 = x + y1                                     # residual (stride == 1)
        z1 = y1 + pA[:, 3:4]                            # RPReLU1
        z1 = jnp.where(z1 > 0, z1, z1 * pA[:, 4:5])
        out1 = z1 + pA[:, 5:6]                          # (C, L), stays resident on-chip

        # ---- stage 2: move2 -> sign -> binary 1x1 conv(s) ------------------------------
        a2 = _sign(out1 + pA[:, 6:7]).astype(jnp.bfloat16)                       # (C, L)
        y2 = jnp.dot(wpw_ref[...], a2, preferred_element_type=jnp.float32)       # (P, L)
        y2 = y2 * pB[:, 0:1] + pB[:, 1:2]               # BatchNorm2 (folded, incl. |w| scale)

        # residual + RPReLU2, one C-wide half at a time -> direct lane-dense stores,
        # no concat([out1]*2) and no concatenated z2 copy in the expansion branch.
        for h in range(expand):
            r0, r1 = h * C, (h + 1) * C
            zh = y2[r0:r1] + out1 + pB[r0:r1, 2:3]
            zh = jnp.where(zh > 0, zh, zh * pB[r0:r1, 3:4])
            o_ref[r0:r1, :] = (zh + pB[r0:r1, 4:5]).astype(o_ref.dtype)

    return kernel


# --------------------------------------------------------------------------------------
# host-side helpers: border masks, batch-tile selection, parameter packing
# --------------------------------------------------------------------------------------
def _make_masks(H, W, bt):
    """(9, bt*H*W) {0,1} bf16 masks: tap t is valid iff its conv source is inside the image."""
    hh, ww = np.meshgrid(np.arange(H), np.arange(W), indexing="ij")
    rows = []
    for dy in range(3):
        for dx in range(3):
            ok = ((hh + dy - 1 >= 0) & (hh + dy - 1 < H) &
                  (ww + dx - 1 >= 0) & (ww + dx - 1 < W))
            rows.append(ok.reshape(-1))
    msk = np.stack(rows, axis=0).astype(np.float32)          # (9, HW)
    msk = np.tile(msk, (1, bt))                              # periodic with period HW
    return jnp.asarray(msk, dtype=jnp.bfloat16)


def _pick_bt(N, C, P, HW, vmem_budget_bytes=20 * 1024 * 1024):
    """Largest divisor of N that fits the VMEM budget, preferring >=2 grid steps (v7x)."""
    def step_bytes(bt):
        lane = bt * HW
        return (2 * C * lane * 4          # double-buffered f32 input block
                + 2 * P * lane * 2        # double-buffered bf16 output block
                + 9 * C * lane * 2        # live bf16 im2col
                + 4 * C * lane * 4        # f32 temporaries (x, out1, y2, ...)
                + 9 * lane * 2)           # border masks
    cands = [d for d in range(1, N + 1)
             if N % d == 0 and (d * HW) % 128 == 0 and step_bytes(d) <= vmem_budget_bytes]
    if not cands:
        return 1
    multi = [d for d in cands if N // d >= 2]                # keep both v7x TCs fed
    return max(multi) if multi else max(cands)


def _prepare_params(p, inplanes, planes):
    C, P = inplanes, planes

    # --- stage 1: 3x3 binary conv ----------------------------------------------------
    w3 = p['w3']                                              # (C, C, 3, 3)  OIHW
    scale3 = jnp.mean(jnp.abs(w3), axis=(1, 2, 3))            # per-out-channel |w| mean
    # weight[o, (dy*3+dx)*C + i] = sign(w3[o, i, dy, dx])  -> matches im2col row ordering
    w3_2d = jnp.transpose(_sign(w3), (0, 2, 3, 1)).reshape(C, 9 * C).astype(jnp.bfloat16)
    g1, b1, m1, v1 = p['bn1']
    inv1 = g1 / jnp.sqrt(v1 + _BN_EPS)
    bn1_s = inv1 * scale3                                     # |w| scale folded here
    bn1_b = b1 - m1 * inv1
    pr1_b0, pr1_sl, pr1_b1 = p['pr1']
    pA = jnp.stack([p['mb1'], bn1_s, bn1_b, pr1_b0, pr1_sl, pr1_b1, p['mb2']],
                   axis=1).astype(jnp.float32)                # (C, 7)

    # --- stage 2: pointwise binary conv(s) --------------------------------------------
    if C == P:
        w = p['wpw']                                          # (P, C, 1, 1)
        scale_pw = jnp.mean(jnp.abs(w), axis=(1, 2, 3))
        wpw_2d = _sign(w)[:, :, 0, 0]                         # (P, C)
        g2, b2, m2, v2 = p['bn2']
    else:
        assert P == 2 * C
        wa, wb = p['wpw1'], p['wpw2']
        scale_pw = jnp.concatenate([jnp.mean(jnp.abs(wa), axis=(1, 2, 3)),
                                    jnp.mean(jnp.abs(wb), axis=(1, 2, 3))])
        wpw_2d = jnp.concatenate([_sign(wa)[:, :, 0, 0], _sign(wb)[:, :, 0, 0]], axis=0)
        g2 = jnp.concatenate([p['bn2_1'][0], p['bn2_2'][0]])
        b2 = jnp.concatenate([p['bn2_1'][1], p['bn2_2'][1]])
        m2 = jnp.concatenate([p['bn2_1'][2], p['bn2_2'][2]])
        v2 = jnp.concatenate([p['bn2_1'][3], p['bn2_2'][3]])
    inv2 = g2 / jnp.sqrt(v2 + _BN_EPS)
    bn2_s = inv2 * scale_pw
    bn2_b = b2 - m2 * inv2
    pr2_b0, pr2_sl, pr2_b1 = p['pr2']
    pB = jnp.stack([bn2_s, bn2_b, pr2_b0, pr2_sl, pr2_b1], axis=1).astype(jnp.float32)  # (P, 5)

    return w3_2d, wpw_2d.astype(jnp.bfloat16), pA, pB


# --------------------------------------------------------------------------------------
# public wrapper (NCHW in / NCHW out)
# --------------------------------------------------------------------------------------
def ranet_block_b(x_nchw, p, inplanes, planes, stride=1, out_dtype=jnp.bfloat16):
    if stride != 1:
        # TODO(synk): stride=2 path (AvgPool2d(2,2) residual + stride-2 binary 3x3 conv).
        raise NotImplementedError("stride=2 path not implemented")
    N, C, H, W = x_nchw.shape
    assert C == inplanes and planes in (C, 2 * C)
    assert C % 8 == 0, "channel count must be a multiple of 8 (f32 sublane tile)"
    P = planes
    HW = H * W

    bt = _pick_bt(N, C, P, HW)
    L = bt * HW
    # TODO(synk): pad HW when bt*HW is not a multiple of 128 (e.g. 14x14 / 7x7 feature maps).
    assert L % 128 == 0, "bt*H*W must be a multiple of 128 for a lane-dense BlockSpec"
    G = N // bt

    # channels-on-sublane / (batch*spatial)-on-lane layout: (C, N*HW); cheap XLA transpose.
    x_flat = jnp.transpose(x_nchw.reshape(N, C, HW).astype(jnp.float32),
                           (1, 0, 2)).reshape(C, N * HW)

    w3_2d, wpw_2d, pA, pB = _prepare_params(p, inplanes, planes)
    masks = _make_masks(H, W, bt)                             # (9, L) bf16, constant block

    kernel = _make_block_kernel(C, P, W, L)
    out = pl.pallas_call(
        kernel,
        out_shape=jax.ShapeDtypeStruct((P, N * HW), out_dtype),
        grid=(G,),
        in_specs=[
            pl.BlockSpec((C, L), lambda b: (0, b)),           # x tile: Bt images on the lane axis
            pl.BlockSpec((C, 9 * C), lambda b: (0, 0)),       # 3x3 weight signs (bf16), resident
            pl.BlockSpec((P, C), lambda b: (0, 0)),           # pw weight signs (bf16), resident
            pl.BlockSpec((9, L), lambda b: (0, 0)),           # precomputed border masks, resident
            pl.BlockSpec((C, 7), lambda b: (0, 0)),           # packed per-channel params, stage 1
            pl.BlockSpec((P, 5), lambda b: (0, 0)),           # packed per-channel params, stage 2
        ],
        out_specs=pl.BlockSpec((P, L), lambda b: (0, b)),
        compiler_params=pltpu.CompilerParams(
            dimension_semantics=("parallel",),                # grid steps independent (v7x dual-TC)
            vmem_limit_bytes=32 * 1024 * 1024),               # cover v5e's 16 MiB scoped default
    )(x_flat, w3_2d, wpw_2d, masks, pA, pB)

    out = jnp.transpose(out.reshape(P, N, HW), (1, 0, 2)).reshape(N, P, H, W)
    return out


# --------------------------------------------------------------------------------------
# Pure-JAX reference (NCHW, same math) for verification
# --------------------------------------------------------------------------------------
def ref_forward(x, p, inplanes, planes, stride=1):
    bc = lambda v: v[None, :, None, None]

    def bnorm(y, g, b, m, v):
        return (y - bc(m)) / jnp.sqrt(bc(v) + _BN_EPS) * bc(g) + bc(b)

    def rprelu(y, b0, sl, b1):
        z = y + bc(b0)
        z = jnp.where(z > 0, z, z * bc(sl))
        return z + bc(b1)

    def conv(a, w, s, pad):
        return jax.lax.conv_general_dilated(
            a, w, (s, s), [(pad, pad), (pad, pad)],
            dimension_numbers=('NCHW', 'OIHW', 'NCHW'),
            precision=jax.lax.Precision.HIGHEST)

    out1 = _sign(x + bc(p['mb1']))
    out1 = conv(out1, _binarize_weight(p['w3']), stride, 1)
    out1 = bnorm(out1, *p['bn1'])
    out1 = x + out1                      # stride == 1
    out1 = rprelu(out1, *p['pr1'])
    a2 = _sign(out1 + bc(p['mb2']))
    if inplanes == planes:
        y = bnorm(conv(a2, _binarize_weight(p['wpw']), 1, 0), *p['bn2']) + out1
    else:
        y1 = bnorm(conv(a2, _binarize_weight(p['wpw1']), 1, 0), *p['bn2_1']) + out1
        y2 = bnorm(conv(a2, _binarize_weight(p['wpw2']), 1, 0), *p['bn2_2']) + out1
        y = jnp.concatenate([y1, y2], axis=1)
    return rprelu(y, *p['pr2'])


# --------------------------------------------------------------------------------------
# deterministic parameter initialization (synthetic; no checkpoint)
# --------------------------------------------------------------------------------------
def init_params(key, inplanes, planes):
    keys = iter(jax.random.split(key, 40))
    vec = lambda c, s=0.1: jax.random.normal(next(keys), (c,), jnp.float32) * s

    def bn(c):
        return (jax.random.normal(next(keys), (c,), jnp.float32) * 0.1 + 1.0,   # gamma
                jax.random.normal(next(keys), (c,), jnp.float32) * 0.1,          # beta
                jax.random.normal(next(keys), (c,), jnp.float32) * 0.1,          # running mean
                jax.random.uniform(next(keys), (c,), jnp.float32, 0.5, 1.5))     # running var

    def rprelu_params(c):
        return (vec(c), jnp.full((c,), 0.25, jnp.float32) + vec(c), vec(c))

    p = {}
    p['mb1'] = vec(inplanes)
    p['w3'] = jax.random.normal(next(keys), (inplanes, inplanes, 3, 3), jnp.float32) * 0.1
    p['bn1'] = bn(inplanes)
    p['pr1'] = rprelu_params(inplanes)
    p['mb2'] = vec(inplanes)
    if inplanes == planes:
        p['wpw'] = jax.random.normal(next(keys), (planes, inplanes, 1, 1), jnp.float32) * 0.1
        p['bn2'] = bn(planes)
    else:
        p['wpw1'] = jax.random.normal(next(keys), (inplanes, inplanes, 1, 1), jnp.float32) * 0.1
        p['wpw2'] = jax.random.normal(next(keys), (inplanes, inplanes, 1, 1), jnp.float32) * 0.1
        p['bn2_1'] = bn(inplanes)
        p['bn2_2'] = bn(inplanes)
    p['pr2'] = rprelu_params(planes)
    return p


# --------------------------------------------------------------------------------------
if __name__ == "__main__":
    key = jax.random.PRNGKey(0)
    kx, kp1, kp2 = jax.random.split(key, 3)

    # N=8 so the batched lane-folded path is exercised (Bt=4 -> 2 grid steps).
    N, C, H, W = 8, 16, 16, 16
    x = jax.random.normal(kx, (N, C, H, W), jnp.float32)

    # config 1: inplanes == planes (identity-width branch), stride=1
    params_eq = init_params(kp1, C, C)
    out_eq = jax.block_until_ready(ranet_block_b(x, params_eq, C, C, stride=1))
    ref_eq = ref_forward(x, params_eq, C, C, stride=1)
    np.testing.assert_allclose(np.asarray(out_eq.astype(jnp.float32)),
                               np.asarray(ref_eq), atol=2e-2, rtol=2e-2)

    # config 2: planes == 2 * inplanes (channel-expansion branch), stride=1
    params_ex = init_params(kp2, C, 2 * C)
    out_ex = jax.block_until_ready(ranet_block_b(x, params_ex, C, 2 * C, stride=1))
    ref_ex = ref_forward(x, params_ex, C, 2 * C, stride=1)
    np.testing.assert_allclose(np.asarray(out_ex.astype(jnp.float32)),
                               np.asarray(ref_ex), atol=2e-2, rtol=2e-2)

    print("KERNEL_OK")
</pallas_src>

<mosaic_0001>
module attributes {stable_mosaic.version = 11 : i64} {
  func.func @kernel(%arg0: i32, %arg1: memref<16x1024xf32, #tpu.memory_space<vmem>>, %arg2: memref<16x144xbf16, #tpu.memory_space<vmem>>, %arg3: memref<16x16xbf16, #tpu.memory_space<vmem>>, %arg4: memref<9x1024xbf16, #tpu.memory_space<vmem>>, %arg5: memref<16x7xf32, #tpu.memory_space<vmem>>, %arg6: memref<16x5xf32, #tpu.memory_space<vmem>>, %arg7: memref<16x1024xbf16, #tpu.memory_space<vmem>>) attributes {dimension_semantics = [#tpu.dimension_semantics<parallel>], iteration_bounds = array<i64: 2>, scalar_prefetch = 0 : i64, scratch_operands = 0 : i64, tpu.core_type = #tpu.core_type<tc>, window_params = [{transform_indices = @transform_0, window_bounds = array<i64: 16, 1024>}, {pipeline_mode = #tpu.pipeline_mode<synchronous>, transform_indices = @transform_1, window_bounds = array<i64: 16, 144>}, {pipeline_mode = #tpu.pipeline_mode<synchronous>, transform_indices = @transform_2, window_bounds = array<i64: 16, 16>}, {pipeline_mode = #tpu.pipeline_mode<synchronous>, transform_indices = @transform_3, window_bounds = array<i64: 9, 1024>}, {pipeline_mode = #tpu.pipeline_mode<synchronous>, transform_indices = @transform_4, window_bounds = array<i64: 16, 7>}, {pipeline_mode = #tpu.pipeline_mode<synchronous>, transform_indices = @transform_5, window_bounds = array<i64: 16, 5>}, {transform_indices = @transform_6, window_bounds = array<i64: 16, 1024>}]} {
    %c0 = arith.constant 0 : index
    %c0_0 = arith.constant 0 : index
    %0 = vector.load %arg1[%c0, %c0_0] : memref<16x1024xf32, #tpu.memory_space<vmem>>, vector<16x1024xf32>
    %c0_1 = arith.constant 0 : index
    %c0_2 = arith.constant 0 : index
    %1 = vector.load %arg5[%c0_1, %c0_2] : memref<16x7xf32, #tpu.memory_space<vmem>>, vector<16x7xf32>
    %c0_3 = arith.constant 0 : index
    %c0_4 = arith.constant 0 : index
    %2 = vector.load %arg6[%c0_3, %c0_4] : memref<16x5xf32, #tpu.memory_space<vmem>>, vector<16x5xf32>
    %c0_5 = arith.constant 0 : index
    %c0_6 = arith.constant 0 : index
    %3 = vector.load %arg4[%c0_5, %c0_6] : memref<9x1024xbf16, #tpu.memory_space<vmem>>, vector<9x1024xbf16>
    %4 = vector.extract_strided_slice %1 {offsets = [0, 0], sizes = [16, 1], strides = [1, 1]} : vector<16x7xf32> to vector<16x1xf32>
    %5 = vector.broadcast %4 : vector<16x1xf32> to vector<16x1024xf32>
    %6 = arith.addf %0, %5 : vector<16x1024xf32>
    %cst = arith.constant 0.000000e+00 : f32
    %7 = vector.broadcast %cst : f32 to vector<16x1024xf32>
    %8 = arith.cmpf ogt, %6, %7 : vector<16x1024xf32>
    %cst_7 = arith.constant 0.000000e+00 : f32
    %9 = vector.broadcast %cst_7 : f32 to vector<16x1024xf32>
    %10 = arith.cmpf olt, %6, %9 : vector<16x1024xf32>
    %cst_8 = arith.constant -1.000000e+00 : f32
    %cst_9 = arith.constant 0.000000e+00 : f32
    %11 = vector.broadcast %cst_8 : f32 to vector<16x1024xf32>
    %12 = vector.broadcast %cst_9 : f32 to vector<16x1024xf32>
    %13 = arith.select %10, %11, %12 : vector<16x1024xi1>, vector<16x1024xf32>
    %cst_10 = arith.constant 1.000000e+00 : f32
    %14 = vector.broadcast %cst_10 : f32 to vector<16x1024xf32>
    %15 = arith.select %8, %14, %13 : vector<16x1024xi1>, vector<16x1024xf32>
    %c17_i32 = arith.constant 17 : i32
    %16 = tpu.dynamic_rotate %15 by %c17_i32 dim 1 : vector<16x1024xf32>, i32 -> vector<16x1024xf32>
    %17 = arith.truncf %16 : vector<16x1024xf32> to vector<16x1024xbf16>
    %18 = vector.extract_strided_slice %3 {offsets = [0, 0], sizes = [1, 1024], strides = [1, 1]} : vector<9x1024xbf16> to vector<1x1024xbf16>
    %19 = vector.shape_cast %18 : vector<1x1024xbf16> to vector<1024xbf16>
    %20 = vector.shape_cast %19 : vector<1024xbf16> to vector<1x1024xbf16>
    %21 = vector.broadcast %20 : vector<1x1024xbf16> to vector<16x1024xbf16>
    %22 = arith.mulf %17, %21 : vector<16x1024xbf16>
    %c16_i32 = arith.constant 16 : i32
    %23 = tpu.dynamic_rotate %15 by %c16_i32 dim 1 : vector<16x1024xf32>, i32 -> vector<16x1024xf32>
    %24 = arith.truncf %23 : vector<16x1024xf32> to vector<16x1024xbf16>
    %25 = vector.extract_strided_slice %3 {offsets = [1, 0], sizes = [1, 1024], strides = [1, 1]} : vector<9x1024xbf16> to vector<1x1024xbf16>
    %26 = vector.shape_cast %25 : vector<1x1024xbf16> to vector<1024xbf16>
    %27 = vector.shape_cast %26 : vector<1024xbf16> to vector<1x1024xbf16>
    %28 = vector.broadcast %27 : vector<1x1024xbf16> to vector<16x1024xbf16>
    %29 = arith.mulf %24, %28 : vector<16x1024xbf16>
    %c15_i32 = arith.constant 15 : i32
    %30 = tpu.dynamic_rotate %15 by %c15_i32 dim 1 : vector<16x1024xf32>, i32 -> vector<16x1024xf32>
    %31 = arith.truncf %30 : vector<16x1024xf32> to vector<16x1024xbf16>
    %32 = vector.extract_strided_slice %3 {offsets = [2, 0], sizes = [1, 1024], strides = [1, 1]} : vector<9x1024xbf16> to vector<1x1024xbf16>
    %33 = vector.shape_cast %32 : vector<1x1024xbf16> to vector<1024xbf16>
    %34 = vector.shape_cast %33 : vector<1024xbf16> to vector<1x1024xbf16>
    %35 = vector.broadcast %34 : vector<1x1024xbf16> to vector<16x1024xbf16>
    %36 = arith.mulf %31, %35 : vector<16x1024xbf16>
    %c1_i32 = arith.constant 1 : i32
    %37 = tpu.dynamic_rotate %15 by %c1_i32 dim 1 : vector<16x1024xf32>, i32 -> vector<16x1024xf32>
    %38 = arith.truncf %37 : vector<16x1024xf32> to vector<16x1024xbf16>
    %39 = vector.extract_strided_slice %3 {offsets = [3, 0], sizes = [1, 1024], strides = [1, 1]} : vector<9x1024xbf16> to vector<1x1024xbf16>
    %40 = vector.shape_cast %39 : vector<1x1024xbf16> to vector<1024xbf16>
    %41 = vector.shape_cast %40 : vector<1024xbf16> to vector<1x1024xbf16>
    %42 = vector.broadcast %41 : vector<1x1024xbf16> to vector<16x1024xbf16>
    %43 = arith.mulf %38, %42 : vector<16x1024xbf16>
    %44 = arith.truncf %15 : vector<16x1024xf32> to vector<16x1024xbf16>
    %45 = vector.extract_strided_slice %3 {offsets = [4, 0], sizes = [1, 1024], strides = [1, 1]} : vector<9x1024xbf16> to vector<1x1024xbf16>
    %46 = vector.shape_cast %45 : vector<1x1024xbf16> to vector<1024xbf16>
    %47 = vector.shape_cast %46 : vector<1024xbf16> to vector<1x1024xbf16>
    %48 = vector.broadcast %47 : vector<1x1024xbf16> to vector<16x1024xbf16>
    %49 = arith.mulf %44, %48 : vector<16x1024xbf16>
    %c1023_i32 = arith.constant 1023 : i32
    %50 = tpu.dynamic_rotate %15 by %c1023_i32 dim 1 : vector<16x1024xf32>, i32 -> vector<16x1024xf32>
    %51 = arith.truncf %50 : vector<16x1024xf32> to vector<16x1024xbf16>
    %52 = vector.extract_strided_slice %3 {offsets = [5, 0], sizes = [1, 1024], strides = [1, 1]} : vector<9x1024xbf16> to vector<1x1024xbf16>
    %53 = vector.shape_cast %52 : vector<1x1024xbf16> to vector<1024xbf16>
    %54 = vector.shape_cast %53 : vector<1024xbf16> to vector<1x1024xbf16>
    %55 = vector.broadcast %54 : vector<1x1024xbf16> to vector<16x1024xbf16>
    %56 = arith.mulf %51, %55 : vector<16x1024xbf16>
    %c1009_i32 = arith.constant 1009 : i32
    %57 = tpu.dynamic_rotate %15 by %c1009_i32 dim 1 : vector<16x1024xf32>, i32 -> vector<16x1024xf32>
    %58 = arith.truncf %57 : vector<16x1024xf32> to vector<16x1024xbf16>
    %59 = vector.extract_strided_slice %3 {offsets = [6, 0], sizes = [1, 1024], strides = [1, 1]} : vector<9x1024xbf16> to vector<1x1024xbf16>
    %60 = vector.shape_cast %59 : vector<1x1024xbf16> to vector<1024xbf16>
    %61 = vector.shape_cast %60 : vector<1024xbf16> to vector<1x1024xbf16>
    %62 = vector.broadcast %61 : vector<1x1024xbf16> to vector<16x1024xbf16>
    %63 = arith.mulf %58, %62 : vector<16x1024xbf16>
    %c1008_i32 = arith.constant 1008 : i32
    %64 = tpu.dynamic_rotate %15 by %c1008_i32 dim 1 : vector<16x1024xf32>, i32 -> vector<16x1024xf32>
    %65 = arith.truncf %64 : vector<16x1024xf32> to vector<16x1024xbf16>
    %66 = vector.extract_strided_slice %3 {offsets = [7, 0], sizes = [1, 1024], strides = [1, 1]} : vector<9x1024xbf16> to vector<1x1024xbf16>
    %67 = vector.shape_cast %66 : vector<1x1024xbf16> to vector<1024xbf16>
    %68 = vector.shape_cast %67 : vector<1024xbf16> to vector<1x1024xbf16>
    %69 = vector.broadcast %68 : vector<1x1024xbf16> to vector<16x1024xbf16>
    %70 = arith.mulf %65, %69 : vector<16x1024xbf16>
    %c1007_i32 = arith.constant 1007 : i32
    %71 = tpu.dynamic_rotate %15 by %c1007_i32 dim 1 : vector<16x1024xf32>, i32 -> vector<16x1024xf32>
    %72 = arith.truncf %71 : vector<16x1024xf32> to vector<16x1024xbf16>
    %73 = vector.extract_strided_slice %3 {offsets = [8, 0], sizes = [1, 1024], strides = [1, 1]} : vector<9x1024xbf16> to vector<1x1024xbf16>
    %74 = vector.shape_cast %73 : vector<1x1024xbf16> to vector<1024xbf16>
    %75 = vector.shape_cast %74 : vector<1024xbf16> to vector<1x1024xbf16>
    %76 = vector.broadcast %75 : vector<1x1024xbf16> to vector<16x1024xbf16>
    %77 = arith.mulf %72, %76 : vector<16x1024xbf16>
    %78 = tpu.concatenate %22, %29, %36, %43, %49, %56, %63, %70, %77 in 0 : vector<16x1024xbf16>, vector<16x1024xbf16>, vector<16x1024xbf16>, vector<16x1024xbf16>, vector<16x1024xbf16>, vector<16x1024xbf16>, vector<16x1024xbf16>, vector<16x1024xbf16>, vector<16x1024xbf16> -> vector<144x1024xbf16>
    %c0_11 = arith.constant 0 : index
    %c0_12 = arith.constant 0 : index
    %79 = vector.load %arg2[%c0_11, %c0_12] : memref<16x144xbf16, #tpu.memory_space<vmem>>, vector<16x144xbf16>
    %cst_13 = arith.constant dense<0.000000e+00> : vector<16x1024xf32>
    %80 = tpu.matmul %79, %78, %cst_13 {dimension_numbers = #tpu.dot_dimension_numbers<[1], [0], [0], [1], [0, 0, 1, 1], [], []>} : vector<16x144xbf16>, vector<144x1024xbf16>, vector<16x1024xf32> -> vector<16x1024xf32>
    %81 = vector.extract_strided_slice %1 {offsets = [0, 1], sizes = [16, 1], strides = [1, 1]} : vector<16x7xf32> to vector<16x1xf32>
    %82 = vector.broadcast %81 : vector<16x1xf32> to vector<16x1024xf32>
    %83 = arith.mulf %80, %82 : vector<16x1024xf32>
    %84 = vector.extract_strided_slice %1 {offsets = [0, 2], sizes = [16, 1], strides = [1, 1]} : vector<16x7xf32> to vector<16x1xf32>
    %85 = vector.broadcast %84 : vector<16x1xf32> to vector<16x1024xf32>
    %86 = arith.addf %83, %85 : vector<16x1024xf32>
    %87 = arith.addf %0, %86 : vector<16x1024xf32>
    %88 = vector.extract_strided_slice %1 {offsets = [0, 3], sizes = [16, 1], strides = [1, 1]} : vector<16x7xf32> to vector<16x1xf32>
    %89 = vector.broadcast %88 : vector<16x1xf32> to vector<16x1024xf32>
    %90 = arith.addf %87, %89 : vector<16x1024xf32>
    %cst_14 = arith.constant 0.000000e+00 : f32
    %91 = vector.broadcast %cst_14 : f32 to vector<16x1024xf32>
    %92 = arith.cmpf ogt, %90, %91 : vector<16x1024xf32>
    %93 = vector.extract_strided_slice %1 {offsets = [0, 4], sizes = [16, 1], strides = [1, 1]} : vector<16x7xf32> to vector<16x1xf32>
    %94 = vector.broadcast %93 : vector<16x1xf32> to vector<16x1024xf32>
    %95 = arith.mulf %90, %94 : vector<16x1024xf32>
    %96 = arith.select %92, %90, %95 : vector<16x1024xi1>, vector<16x1024xf32>
    %97 = vector.extract_strided_slice %1 {offsets = [0, 5], sizes = [16, 1], strides = [1, 1]} : vector<16x7xf32> to vector<16x1xf32>
    %98 = vector.broadcast %97 : vector<16x1xf32> to vector<16x1024xf32>
    %99 = arith.addf %96, %98 : vector<16x1024xf32>
    %100 = vector.extract_strided_slice %1 {offsets = [0, 6], sizes = [16, 1], strides = [1, 1]} : vector<16x7xf32> to vector<16x1xf32>
    %101 = vector.broadcast %100 : vector<16x1xf32> to vector<16x1024xf32>
    %102 = arith.addf %99, %101 : vector<16x1024xf32>
    %cst_15 = arith.constant 0.000000e+00 : f32
    %103 = vector.broadcast %cst_15 : f32 to vector<16x1024xf32>
    %104 = arith.cmpf ogt, %102, %103 : vector<16x1024xf32>
    %cst_16 = arith.constant 0.000000e+00 : f32
    %105 = vector.broadcast %cst_16 : f32 to vector<16x1024xf32>
    %106 = arith.cmpf olt, %102, %105 : vector<16x1024xf32>
    %cst_17 = arith.constant -1.000000e+00 : f32
    %cst_18 = arith.constant 0.000000e+00 : f32
    %107 = vector.broadcast %cst_17 : f32 to vector<16x1024xf32>
    %108 = vector.broadcast %cst_18 : f32 to vector<16x1024xf32>
    %109 = arith.select %106, %107, %108 : vector<16x1024xi1>, vector<16x1024xf32>
    %cst_19 = arith.constant 1.000000e+00 : f32
    %110 = vector.broadcast %cst_19 : f32 to vector<16x1024xf32>
    %111 = arith.select %104, %110, %109 : vector<16x1024xi1>, vector<16x1024xf32>
    %112 = arith.truncf %111 : vector<16x1024xf32> to vector<16x1024xbf16>
    %c0_20 = arith.constant 0 : index
    %c0_21 = arith.constant 0 : index
    %113 = vector.load %arg3[%c0_20, %c0_21] : memref<16x16xbf16, #tpu.memory_space<vmem>>, vector<16x16xbf16>
    %cst_22 = arith.constant dense<0.000000e+00> : vector<16x1024xf32>
    %114 = tpu.matmul %113, %112, %cst_22 {dimension_numbers = #tpu.dot_dimension_numbers<[1], [0], [0], [1], [0, 0, 1, 1], [], []>} : vector<16x16xbf16>, vector<16x1024xbf16>, vector<16x1024xf32> -> vector<16x1024xf32>
    %115 = vector.extract_strided_slice %2 {offsets = [0, 0], sizes = [16, 1], strides = [1, 1]} : vector<16x5xf32> to vector<16x1xf32>
    %116 = vector.broadcast %115 : vector<16x1xf32> to vector<16x1024xf32>
    %117 = arith.mulf %114, %116 : vector<16x1024xf32>
    %118 = vector.extract_strided_slice %2 {offsets = [0, 1], sizes = [16, 1], strides = [1, 1]} : vector<16x5xf32> to vector<16x1xf32>
    %119 = vector.broadcast %118 : vector<16x1xf32> to vector<16x1024xf32>
    %120 = arith.addf %117, %119 : vector<16x1024xf32>
    %121 = arith.addf %120, %99 : vector<16x1024xf32>
    %122 = vector.extract_strided_slice %2 {offsets = [0, 2], sizes = [16, 1], strides = [1, 1]} : vector<16x5xf32> to vector<16x1xf32>
    %123 = vector.broadcast %122 : vector<16x1xf32> to vector<16x1024xf32>
    %124 = arith.addf %121, %123 : vector<16x1024xf32>
    %cst_23 = arith.constant 0.000000e+00 : f32
    %125 = vector.broadcast %cst_23 : f32 to vector<16x1024xf32>
    %126 = arith.cmpf ogt, %124, %125 : vector<16x1024xf32>
    %127 = vector.extract_strided_slice %2 {offsets = [0, 3], sizes = [16, 1], strides = [1, 1]} : vector<16x5xf32> to vector<16x1xf32>
    %128 = vector.broadcast %127 : vector<16x1xf32> to vector<16x1024xf32>
    %129 = arith.mulf %124, %128 : vector<16x1024xf32>
    %130 = arith.select %126, %124, %129 : vector<16x1024xi1>, vector<16x1024xf32>
    %131 = vector.extract_strided_slice %2 {offsets = [0, 4], sizes = [16, 1], strides = [1, 1]} : vector<16x5xf32> to vector<16x1xf32>
    %132 = vector.broadcast %131 : vector<16x1xf32> to vector<16x1024xf32>
    %133 = arith.addf %130, %132 : vector<16x1024xf32>
    %134 = arith.truncf %133 : vector<16x1024xf32> to vector<16x1024xbf16>
    %c0_24 = arith.constant 0 : index
    %c0_25 = arith.constant 0 : index
    %135 = vector.load %arg7[%c0_24, %c0_25] : memref<16x1024xbf16, #tpu.memory_space<vmem>>, vector<16x1024xbf16>
    tpu.vector_store %arg7[%c0_24, %c0_25], %134 {strides = array<i32>} : memref<16x1024xbf16, #tpu.memory_space<vmem>>, vector<16x1024xbf16>,
    return
  }
  func.func @transform_0(%arg0: i32) -> (i32, i32) {
    %c0_i32 = arith.constant 0 : i32
    %c0_i32_0 = arith.constant 0 : i32
    return %c0_i32, %arg0 : i32, i32
  }
  func.func @transform_1(%arg0: i32) -> (i32, i32) {
    %c0_i32 = arith.constant 0 : i32
    %c0_i32_0 = arith.constant 0 : i32
    %c0_i32_1 = arith.constant 0 : i32
    return %c0_i32, %c0_i32_0 : i32, i32
  }
  func.func @transform_2(%arg0: i32) -> (i32, i32) {
    %c0_i32 = arith.constant 0 : i32
    %c0_i32_0 = arith.constant 0 : i32
    %c0_i32_1 = arith.constant 0 : i32
    return %c0_i32, %c0_i32_0 : i32, i32
  }
  func.func @transform_3(%arg0: i32) -> (i32, i32) {
    %c0_i32 = arith.constant 0 : i32
    %c0_i32_0 = arith.constant 0 : i32
    %c0_i32_1 = arith.constant 0 : i32
    return %c0_i32, %c0_i32_0 : i32, i32
  }
  func.func @transform_4(%arg0: i32) -> (i32, i32) {
    %c0_i32 = arith.constant 0 : i32
    %c0_i32_0 = arith.constant 0 : i32
    %c0_i32_1 = arith.constant 0 : i32
    return %c0_i32, %c0_i32_0 : i32, i32
  }
  func.func @transform_5(%arg0: i32) -> (i32, i32) {
    %c0_i32 = arith.constant 0 : i32
    %c0_i32_0 = arith.constant 0 : i32
    %c0_i32_1 = arith.constant 0 : i32
    return %c0_i32, %c0_i32_0 : i32, i32
  }
  func.func @transform_6(%arg0: i32) -> (i32, i32) {
    %c0_i32 = arith.constant 0 : i32
    %c0_i32_0 = arith.constant 0 : i32
    return %c0_i32, %arg0 : i32, i32
  }
}

</mosaic_0001>

<bundles_post_ra>
// kernel: tpu_custom_call.1
= control target key start
LH: loop header
LB: loop body
LE: loop exit
PB: predicated region body
PF: predicated region fallthrough
CT: control target
= control target key end

     0   :  { %11 = vsyncpa [#allocation3], 0  ;;  %s4860_s0 = inlined_call_operand.hbm [shape: f32[16,2048], index: 0, kind: input, shape index: {}]   ;;  %s4861_s1 = inlined_call_operand.vmem [shape: bf16[16,144], index: 1, kind: input, shape index: {}]   ;;  %s4862_s2 = inlined_call_operand.vmem [shape: bf16[16,16], index: 2, kind: input, shape index: {}]   ;;  %s4863_s3 = inlined_call_operand.hbm [shape: bf16[9,1024], index: 3, kind: input, shape index: {}]   ;;  %s4864_s4 = inlined_call_operand.vmem [shape: f32[16,7], index: 4, kind: input, shape index: {}]   ;;  %s4865_s5 = inlined_call_operand.vmem [shape: f32[16,5], index: 5, kind: input, shape index: {}]   ;;  %s4866_s6 = inlined_call_operand.hbm [shape: bf16[16,2048], index: 6, kind: output, shape index: {}]  }
   0x1   :  { %13 = vsyncpa [#allocation3 + $0x1], 0 }
   0x2   :  { %14 = vsyncpa [#allocation6], 0 }
   0x3   :  { %15 = vsyncpa [#allocation4], 0 }
   0x4   :  { %17 = vsyncpa [#allocation4 + $0x1], 0  ;;  %s3013_s21 = smov 0   ;;  %s3015_s22 = smov 0  }
   0x5   :  { %s3017_s23 = smov 0   ;;  %s3019_s24 = smov 0  }
   0x6 LB: > { %s3034_s25 = sadd.s32 4294967295, %s2949_s24   ;;  %s2300_s26 = sadd.s32 4294967294, %s2949_s24   ;;  %s2949_s24 = sphi %s3019_s24, %s5025_s24   ;;  %s2945_s23 = sphi %s3017_s23, %s5024_s23   ;;  %s2941_s22 = sphi %s3015_s22, %s5023_s22   ;;  %s2937_s21 = sphi %s3013_s21, %s5022_s21  }
   0x7   : > { %s3038_s27 = sadd.s32 1, %s2949_s24   ;;  %s30_s28 = sadd.s32 1, %s2945_s23 }
   0x8   : > { %s27_s29 = ssub.s32 %s2949_s24, %s3038_s27  ;;  %p37_p0 = scmp.ne.s32.totalorder %s2945_s23, %s2941_s22 }
   0x9   : > { %p28_p1 = scmp.eq.s32.totalorder %s27_s29, 0  ;;  %p38_p2 = scmp.eq.s32.totalorder %s2949_s24, 0 }
   0xa   : > { %p43_p3 = scmp.ne.s32.totalorder %s2941_s22, %s2937_s21  ;;  %p4867_p4 = scmp.eq.s32.totalorder %s3034_s25, 0 }
   0xb   : > { %s3050_s30 = scalar_select %p28_p1, %s2945_s23, %s30_s28  }
   0xc   : > { %p3052_p5 = por %p38_p2, %p37_p0  ;;  %p3058_p6 = por %p4867_p4, %p43_p3 }
   0xd   : > { %4928 = sst [smem:[#allocation11_spill]] %s3050_s30  ;;  %p172_p7 = scmp.eq.s32.totalorder %s3034_s25, 1 }
   0xe   : > { %s4929_s7 = scalar_select %p3052_p5, 1, 0 }
   0xf   : > { %s4930_s8 = scalar_select %p3058_p6, 1, 0 }
  0x10   : > { %p178_p8 = scmp.eq.s32.totalorder %s2300_s26, 1  ;;  %p2301_p9 = scmp.ge.s32.totalorder %s2949_s24, 1 }
  0x11   : > { %p185_p10 = scmp.lt.s32.totalorder %s2949_s24, 3  ;;  %p3065_p11 = por %p172_p7, %p37_p0 }
  0x12   : > { %p3069_p12 = por %p178_p8, %p43_p3  ;;  %s2951_s12 = smov [#allocation5]  }
  0x13   : > { %s4931_s9 = scalar_select %p3065_p11, 1, 0 }
  0x14   : > { %s4932_s10 = scalar_select %p3069_p12, 1, 0 }
  0x15   : > { %p3073_p13 = pnand %p2301_p9, %p185_p10  ;;  %s203_s13 = sshll.u32 %s2951_s12, 4  ;;  %s204_s13 = int_to_ptr.vmem [resolvable:$true] %s203_s13 }
  0x16   : > { %s223_s15 = sand.u32 1, %s2945_s23   ;;  %s2821_s18 = scalar_lea.hbm %s4863_s3, 1024 }
  0x17   : > { %s4933_s11 = scalar_select %p3073_p13, 1, 0 }
  0x18   : > { %p2369_p1 = pneg %p3073_p13  ;;  %p2822_p7 = scmp.ne.s32.totalorder %s4863_s3, %s2821_s18 }
  0x1a   : > { %p3081_p2 = pnand %p2369_p1, %p4867_p4  ;;  %p2828_p1 = scmp.lt.u32.totalorder %s2821_s18, %s4863_s3 }
  0x1c   : > { %p2823_p8 = pneg %p3081_p2 }
  0x1e   : > { %p2824_p9 = pnand %p2823_p8, %p2822_p7 }
  0x20   : > { %p2825_p10 = pneg %p2824_p9 }
  0x22   : > { %p2830_p4 = pnand %p2828_p1, %p2825_p10 }
  0x24   : > { %2833 = shalt.err (!%p2830_p4)
}
  0x25   : > { %s2834_s29 = scalar_lea.vmem %s204_s13, 1024  ;;  %p2842_p11 = scmp.lt.s32.totalorder %s204_s13, %s204_s13 }
  0x26   : > { %p2835_p0 = scmp.ne.s32.totalorder %s204_s13, %s2834_s29  ;;  %p2843_p6 = scmp.lt.s32.totalorder %s2834_s29, %s2834_s29 }
  0x28   : > { %p2837_p3 = pnand %p2835_p0, %p2823_p8  ;;  %p2844_p13 = por %p2843_p6, %p2842_p11 }
  0x2a   : > { %p2838_p12 = pneg %p2837_p3 }
  0x2c   : > { %p2845_p5 = pnand %p2844_p13, %p2838_p12 }
  0x2e   : > { %2848 = shalt.err (!%p2845_p5)
}
  0x2f   : > { %s2952_s12 = smov 512   ;;  %s2953_s16 = smov 32  }
  0x30   : > { %2372 = dma.hbm_to_vmem [thread:$0]  (!%p3081_p2), %s4863_s3, 1024, %s204_s13, [#allocation6], %s2952_s12, %s2952_s12, %s2953_s16  }
  0x31   : > { %p4935_p4 = scmp.ne.s32.totalorder %s4929_s7, 0  ;;  %p4936_p7 = scmp.lt.s32.totalorder %s2949_s24, 2 }
  0x32   : > { %s2304_s20 = sshll.u32 %s223_s15, 7  ;;  %s2351_s26 = sshll.u32 %s2949_s24, 10 }
  0x33   : > { %p3108_p0 = pnand %p4936_p7, %p4935_p4  ;;  %s3116_s30 = scalar_lea.hbm %s4860_s0, %s2351_s26 }
  0x34   : > { %s227_s13 = scalar_lea.vmem [#allocation2], %s2304_s20  ;;  %s3120_s14 = scalar_lea.sflag [#allocation3], %s223_s15 }
  0x35   : > { %s234_s7 = sshll.u32 %s227_s13, 4  ;;  %s2849_s12 = scalar_lea.hbm %s3116_s30, 2048  ;;  %s3118_s7 = int_to_ptr.vmem [resolvable:$true] %s234_s7 }
  0x36   : > { %p2850_p5 = scmp.ne.s32.totalorder %s3116_s30, %s2849_s12  ;;  %p2851_p6 = pneg %p3108_p0 }
  0x37   : > { %s2854_s18 = scalar_lea.hbm %s4860_s0, 4096  ;;  %p2855_p13 = scmp.lt.u32.totalorder %s3116_s30, %s4860_s0 }
  0x38   : > { %p2852_p11 = pnand %p2851_p6, %p2850_p5  ;;  %p2856_p2 = scmp.lt.u32.totalorder %s2854_s18, %s2849_s12 }
  0x39   : > { %p2858_p8 = scmp.lt.u32.totalorder %s2849_s12, %s3116_s30 }
  0x3a   : > { %p2853_p12 = pneg %p2852_p11  ;;  %p2857_p3 = por %p2856_p2, %p2855_p13 }
  0x3c   : > { %p2859_p9 = por %p2858_p8, %p2857_p3 }
  0x3e   : > { %p2860_p10 = pnand %p2859_p9, %p2853_p12 }
  0x40   : > { %2863 = shalt.err (!%p2860_p10)
}
  0x41   : > { %s2864_s15 = scalar_lea.vmem %s3118_s7, 2048  ;;  %s2954_s20 = smov [#allocation2]  }
  0x42   : > { %p2865_p1 = scmp.ne.s32.totalorder %s3118_s7, %s2864_s15  ;;  %s2869_s29 = sshll.u32 %s2954_s20, 4  ;;  %s2870_s29 = int_to_ptr.vmem [resolvable:$false] %s2869_s29 }
  0x43   : > { %s2871_s13 = scalar_lea.vmem %s2870_s29, 4096  ;;  %p2872_p5 = scmp.lt.s32.totalorder %s3118_s7, %s2870_s29 }
  0x44   : > { %p2867_p4 = pnand %p2865_p1, %p2851_p6  ;;  %p2873_p11 = scmp.lt.s32.totalorder %s2871_s13, %s2864_s15 }
  0x46   : > { %p2868_p7 = pneg %p2867_p4  ;;  %p2874_p13 = por %p2873_p11, %p2872_p5 }
  0x48   : > { %p2875_p2 = pnand %p2874_p13, %p2868_p7 }
  0x4a   : > { %2878 = shalt.err (!%p2875_p2)
}
  0x4b   : > { %s2955_s12 = smov 2048   ;;  %s2956_s16 = smov 1024  }
  0x4c   : > { %s2957_s17 = smov 64   ;;  %p4938_p6 = scmp.ne.s32.totalorder %s4933_s11, 0 }
  0x4d   : > { %2376 = dma.hbm_to_vmem [thread:$0]  (!%p3108_p0), %s3116_s30, 2048, %s3118_s7, %s3120_s14, %s2955_s12, %s2956_s16, %s2957_s17  }
  0x4e   : > { %246 = sbr.rel (%p4938_p6) target bundleno = 995 (0x3e3), region = 44 }
  0x55   : > { %s3151_s18 = sand.u32 1, %s2941_s22   ;;  %p4939_p12 = scmp.ne.s32.totalorder %s4930_s8, 0 }
  0x56   : > { %s2308_s26 = sshll.u32 %s3151_s18, 7  ;;  %s249_s28 = scalar_lea.sflag [#allocation3], %s3151_s18 }
  0x57   : > { %s3155_s15 = scalar_lea.vmem [#allocation2], %s2308_s26 }
  0x58   : > { %2924 = dma.done.wait (%p4939_p12), %s249_s28, 2048  }
  0x59   : > { %2926 = vsyncadd (%p4939_p12), %s249_s28, 4294965248  ;;  %p4940_p0 = scmp.eq.s32.totalorder %s3034_s25, 0 }
  0x5b   : > { %2928 = dma.done.wait (%p4940_p0), [#allocation6], 1024   ;;  %p4941_p3 = pmov %p4940_p0 }
  0x5c   : > { %v4879_v0 = vmov 0   ;;  %v3169_v1 = vld [vmem:[%s4864_s4] sm:$0xff]  ;;  %v3175_v2 = vld [vmem:[%s4864_s4 + $0x8] sm:$0xff]  ;;  %v290_v4 = vld [vmem:[%s3155_s15 + $0x10] sm:$0xff]  ;;  %v4871_v24 = vmov 0.0   ;;  %s2960_s7 = smov 17  }
  0x5d   : > { %2930 = vsyncadd (%p4941_p3), [#allocation6], 4294966272  ;;  %2442 = vset.pattern.permute.xlu0 %v4879_v0  ;;  %v288_v5 = vld [vmem:[%s3155_s15] sm:$0xff]  ;;  %v295_v6 = vld [vmem:[%s3155_s15 + $0x38] sm:$0xff]  ;;  %s2961_s14 = smov 16   ;;  %s2962_s20 = smov 15  }
  0x5e   : > { %318 = vperm.xlu0 %2442, %v3169_v1   ;;  %v298_v8 = vld [vmem:[%s3155_s15 + $0x50] sm:$0xff]  ;;  %v303_v10 = vld [vmem:[%s3155_s15 + $0x78] sm:$0xff]  ;;  %v296_v12 = vld [vmem:[%s3155_s15 + $0x40] sm:$0xff]  ;;  %s2963_s29 = smov 1   ;;  %s2964_s13 = smov 127  }
  0x5f   : > { %v297_v13 = vld [vmem:[%s3155_s15 + $0x48] sm:$0xff]  ;;  %v291_v15 = vld [vmem:[%s3155_s15 + $0x18] sm:$0xff]  ;;  %v300_v49 = vld [vmem:[%s3155_s15 + $0x60] sm:$0xff]  ;;  %s2965_s12 = smov 113   ;;  %s2966_s16 = smov 112  }
  0x60   : > { %v289_v14 = vld [vmem:[%s3155_s15 + $0x8] sm:$0xff]  ;;  %v299_v23 = vld [vmem:[%s3155_s15 + $0x58] sm:$0xff]  ;;  %v292_v51 = vld [vmem:[%s3155_s15 + $0x20] sm:$0xff]  ;;  %s2967_s17 = smov 111   ;;  %s2360_s11 = sshll.u32 %s3034_s25, 9 }
  0x61   : > { %v301_v50 = vld [vmem:[%s3155_s15 + $0x68] sm:$0xff]  ;;  %v302_v54 = vld [vmem:[%s3155_s15 + $0x70] sm:$0xff]  ;;  %s2204_s25 = scalar_lea.sflag [#allocation4], %s3151_s18  ;;  %p5018_p9 = scmp.ne.s32.totalorder %s4931_s9, 0 }
  0x62   : > { %323 = vperm.xlu0 %2442, %v3175_v2   ;;  %v293_v53 = vld [vmem:[%s3155_s15 + $0x28] sm:$0xff]  ;;  %v294_v56 = vld [vmem:[%s3155_s15 + $0x30] sm:$0xff] }
  0xdd   : > { %v3178_v3 = vpop.permute.xlu0 %318 }
  0xde   : > { %v328_v9 = vadd.f32 %v3178_v3, %v290_v4  ;;  %v326_v11 = vadd.f32 %v3178_v3, %v288_v5  ;;  %v333_v16 = vadd.f32 %v3178_v3, %v295_v6  ;;  %v327_v21 = vadd.f32 %v3178_v3, %v289_v14 }
  0xdf   : > { %v329_v22 = vadd.f32 %v3178_v3, %v291_v15  ;;  %v330_v59 = vadd.f32 %v3178_v3, %v292_v51  ;;  %v331_v60 = vadd.f32 %v3178_v3, %v293_v53  ;;  %v332_v62 = vadd.f32 %v3178_v3, %v294_v56 }
  0xe0   : > { %vm360_vm0 = vcmp.lt.f32.partialorder %v328_v9, 0.0  ;;  %vm342_vm1 = vcmp.gt.f32.partialorder %v326_v11, 0.0  ;;  %vm344_vm2 = vcmp.gt.f32.partialorder %v328_v9, 0.0  ;;  %vm349_vm3 = vcmp.gt.f32.partialorder %v333_v16, 0.0 }
  0xe1   : > { %v3183_v7 = vpop.permute.xlu0 %323  ;;  %vm365_vm6 = vcmp.lt.f32.partialorder %v333_v16, 0.0  ;;  %v376_v25 = vsel %vm360_vm0, -1.0, %v4871_v24  ;;  %vm358_vm8 = vcmp.lt.f32.partialorder %v326_v11, 0.0  ;;  %vm359_vm13 = vcmp.lt.f32.partialorder %v327_v21, 0.0 }
  0xe2   : > { %v336_v17 = vadd.f32 %v3183_v7, %v298_v8  ;;  %v341_v18 = vadd.f32 %v3183_v7, %v303_v10  ;;  %v334_v19 = vadd.f32 %v3183_v7, %v296_v12  ;;  %v335_v20 = vadd.f32 %v3183_v7, %v297_v13 }
  0xe3   : > { %v337_v27 = vadd.f32 %v3183_v7, %v299_v23  ;;  %v381_v30 = vsel %vm365_vm6, -1.0, %v4871_v24  ;;  %v3209_v31 = vsel %vm344_vm2, 1.0, %v376_v25  ;;  %v374_v34 = vsel %vm358_vm8, -1.0, %v4871_v24  ;;  %v2789_v23 = vld [vmem:[%s4861_s1 + $0x4] ss:$8 sps:$4 sm:$0xff]  }
  0xe4   : > { %vm352_vm4 = vcmp.gt.f32.partialorder %v336_v17, 0.0  ;;  %vm368_vm5 = vcmp.lt.f32.partialorder %v336_v17, 0.0  ;;  %vm373_vm7 = vcmp.lt.f32.partialorder %v341_v18, 0.0  ;;  %vm366_vm9 = vcmp.lt.f32.partialorder %v334_v19, 0.0 }
  0xe5   : > { %v384_v26 = vsel %vm368_vm5, -1.0, %v4871_v24  ;;  %vm367_vm10 = vcmp.lt.f32.partialorder %v335_v20, 0.0  ;;  %vm350_vm11 = vcmp.gt.f32.partialorder %v334_v19, 0.0  ;;  %vm357_vm12 = vcmp.gt.f32.partialorder %v341_v18, 0.0 }
  0xe6   : > { %v389_v28 = vsel %vm373_vm7, -1.0, %v4871_v24  ;;  %v3205_v29 = vsel %vm352_vm4, 1.0, %v384_v26  ;;  %vm351_vm14 = vcmp.gt.f32.partialorder %v335_v20, 0.0  ;;  %v383_v32 = vsel %vm367_vm10, -1.0, %v4871_v24 }
  0xe7   : > { %v3214_v33 = vpack.i.bf16 %v3205_v29, %v3209_v31  ;;  %v382_v35 = vsel %vm366_vm9, -1.0, %v4871_v24  ;;  %vm369_vm15 = vcmp.lt.f32.partialorder %v337_v27, 0.0  ;;  %v3218_v36 = vsel %vm357_vm12, 1.0, %v389_v28  ;;  %v308_v28 = vld [vmem:[#allocation5] sm:$0xff] }
  0xe8   : > { %v3221_v37 = vsel %vm342_vm1, 1.0, %v374_v34  ;;  %v3223_v38 = vsel %vm350_vm11, 1.0, %v382_v35  ;;  %vm343_vm0 = vcmp.gt.f32.partialorder %v327_v21, 0.0  ;;  %v375_v39 = vsel %vm359_vm13, -1.0, %v4871_v24 }
  0xe9   : > { %2454 = vrot.lane.b32.xlu0 %v3214_v33, %s2960_s7  ;;  %v3230_v40 = vpack.i.bf16 %v3223_v38, %v3221_v37  ;;  %vm361_vm2 = vcmp.lt.f32.partialorder %v329_v22, 0.0  ;;  %v3233_v41 = vsel %vm349_vm3, 1.0, %v381_v30  ;;  %v3236_v42 = vsel %vm351_vm14, 1.0, %v383_v32  ;;  %v309_v30 = vld [vmem:[#allocation5 + $0x8] sm:$0xff] }
  0xea   : > { %vm353_vm1 = vcmp.gt.f32.partialorder %v337_v27, 0.0  ;;  %v385_v43 = vsel %vm369_vm15, -1.0, %v4871_v24  ;;  %v3243_v44 = vpack.i.bf16 %v3218_v36, %v3233_v41  ;;  %v3245_v45 = vsel %vm343_vm0, 1.0, %v375_v39 }
  0xeb   : > { %2444 = vrot.lane.b32.xlu1 %v3230_v40, %s2960_s7  ;;  %vm345_vm3 = vcmp.gt.f32.partialorder %v329_v22, 0.0  ;;  %v377_v46 = vsel %vm361_vm2, -1.0, %v4871_v24  ;;  %v3252_v47 = vpack.i.bf16 %v3236_v42, %v3245_v45  ;;  %v3254_v48 = vsel %vm353_vm1, 1.0, %v385_v43 }
  0xec   : > { %v3261_v52 = vsel %vm345_vm3, 1.0, %v377_v46  ;;  %v338_v57 = vadd.f32 %v3183_v7, %v300_v49  ;;  %v339_v58 = vadd.f32 %v3183_v7, %v301_v50  ;;  %v340_v61 = vadd.f32 %v3183_v7, %v302_v54  ;;  %v311_v46 = vld [vmem:[#allocation5 + $0x18] sm:$0xff] }
  0xed   : > { %2464 = vrot.lane.b32.xlu0 %v3243_v44, %s2960_s7  ;;  %v3269_v55 = vpack.i.bf16 %v3254_v48, %v3261_v52  ;;  %vm362_vm6 = vcmp.lt.f32.partialorder %v330_v59, 0.0  ;;  %vm363_vm7 = vcmp.lt.f32.partialorder %v331_v60, 0.0  ;;  %vm346_vm11 = vcmp.gt.f32.partialorder %v330_v59, 0.0 }
  0xee   : > { %vm370_vm4 = vcmp.lt.f32.partialorder %v338_v57, 0.0  ;;  %vm371_vm5 = vcmp.lt.f32.partialorder %v339_v58, 0.0  ;;  %vm354_vm8 = vcmp.gt.f32.partialorder %v338_v57, 0.0  ;;  %vm355_vm9 = vcmp.gt.f32.partialorder %v339_v58, 0.0 }
  0xef   : > { %2449 = vrot.lane.b32.xlu1 %v3252_v47, %s2960_s7  ;;  %vm372_vm10 = vcmp.lt.f32.partialorder %v340_v61, 0.0  ;;  %v386_v63 = vsel %vm370_vm4, -1.0, %v4871_v24  ;;  %v387_v4 = vsel %vm371_vm5, -1.0, %v4871_v24  ;;  %vm347_vm12 = vcmp.gt.f32.partialorder %v331_v60, 0.0 }
  0xf0   : > { %vm364_vm13 = vcmp.lt.f32.partialorder %v332_v62, 0.0  ;;  %v378_v3 = vsel %vm362_vm6, -1.0, %v4871_v24  ;;  %v379_v5 = vsel %vm363_vm7, -1.0, %v4871_v24  ;;  %vm356_vm14 = vcmp.gt.f32.partialorder %v340_v61, 0.0 }
  0xf1   : > { %2474 = vrot.lane.b32.xlu0 %v3252_v47, %s2961_s14  ;;  %v388_v6 = vsel %vm372_vm10, -1.0, %v4871_v24  ;;  %v3293_v7 = vsel %vm354_vm8, 1.0, %v386_v63  ;;  %v3295_v8 = vsel %vm355_vm9, 1.0, %v387_v4  ;;  %vm348_vm15 = vcmp.gt.f32.partialorder %v332_v62, 0.0 }
  0xf2   : > { %v380_v11 = vsel %vm364_vm13, -1.0, %v4871_v24  ;;  %v3307_v13 = vsel %vm346_vm11, 1.0, %v378_v3  ;;  %v3310_v14 = vsel %vm347_vm12, 1.0, %v379_v5  ;;  %v3312_v15 = vsel %vm356_vm14, 1.0, %v388_v6 }
  0xf3   : > { %2459 = vrot.lane.b32.xlu1 %v3269_v55, %s2960_s7  ;;  %v3322_v19 = vsel %vm348_vm15, 1.0, %v380_v11  ;;  %v2558_v22 = vpack.i.bf16 %v3293_v7, %v3307_v13  ;;  %vm1355_vm0 = vcmask 130048   ;;  %v3396_v26 = vpack.i.bf16 %v3295_v8, %v3310_v14 }
  0xf4   : > { %v3386_v25 = vpack.i.bf16 %v3312_v15, %v3322_v19  ;;  %2330 = vmatprep.mubr.msk.bf16.mxu1 %vm1355_vm0, %v2789_v23  ;;  %2329 = vmatprep.mubr.msk.bf16.mxu0 %vm1355_vm0, %v2789_v23  ;;  %v438_v27 = vlaneseq  ;;  %v3427_v34 = vcombine.high %v309_v30, %v309_v30  ;;  %v3429_v35 = vcombine.low %v308_v28, %v308_v28 }
  0xf5   : > { %2484 = vrot.lane.b32.xlu0 %v3269_v55, %s2961_s14  ;;  %v3431_v39 = vcombine.low %v309_v30, %v309_v30  ;;  %v3459_v57 = vcombine.low %v311_v46, %v311_v46  ;;  %v3461_v58 = vcombine.high %v311_v46, %v311_v46 }
  0xf6   : > { %v3425_v32 = vshrl.u32 %v438_v27, 7  ;;  %v3435_v43 = vand.u32 127, %v438_v27  ;;  %v3449_v54 = vpack.i.b16 %v3427_v34, %v3427_v34  ;;  %v606_v17 = vshrl.u32 %v3429_v35, 16 }
  0xf7   : > { %2469 = vrot.lane.b32.xlu1 %v3230_v40, %s2961_s14  ;;  %v3457_v56 = vpack.i.b16 %v3431_v39, %v3431_v39 }
  0xf8   : > { %v3440_v50 = vsub.s32 0, %v3425_v32  ;;  %v3443_v51 = vsub.s32 2, %v3425_v32  ;;  %vm440_vm2 = vcmp.lt.s32.totalorder %v3435_v43, 17  ;;  %vm581_vm1 = vcmp.lt.s32.totalorder %v3435_v43, 16 }
  0xf9   : > { %2494 = vrot.lane.b32.xlu0 %v3230_v40, %s2962_s20  ;;  %vm702_vm3 = vcmp.lt.s32.totalorder %v3435_v43, 15  ;;  %vm799_vm4 = vcmp.lt.s32.totalorder %v3435_v43, 1  ;;  %vm944_vm5 = vcmp.lt.s32.totalorder %v3435_v43, 127  ;;  %vm1041_vm6 = vcmp.lt.s32.totalorder %v3435_v43, 113 }
  0xfa   : > { %vm1138_vm7 = vcmp.lt.s32.totalorder %v3435_v43, 112  ;;  %vm1235_vm8 = vcmp.lt.s32.totalorder %v3435_v43, 111  ;;  %v307_v43 = vld [vmem:[%s4865_s5 + $0x8] sm:$0xff] }
  0xfb   : > { %2479 = vrot.lane.b32.xlu1 %v3214_v33, %s2961_s14 }
  0xfd   : > { %2504 = vrot.lane.b32.xlu0 %v3214_v33, %s2962_s20 }
  0xff   : > { %2489 = vrot.lane.b32.xlu1 %v3243_v44, %s2961_s14 }
 0x101   : > { %2514 = vrot.lane.b32.xlu0 %v3243_v44, %s2962_s20 }
 0x103   : > { %2499 = vrot.lane.b32.xlu1 %v3252_v47, %s2962_s20 }
 0x105   : > { %2524 = vrot.lane.b32.xlu0 %v3252_v47, %s2963_s29 }
 0x107   : > { %2509 = vrot.lane.b32.xlu1 %v3269_v55, %s2962_s20 }
 0x109   : > { %2534 = vrot.lane.b32.xlu0 %v3269_v55, %s2963_s29 }
 0x10b   : > { %2519 = vrot.lane.b32.xlu1 %v3230_v40, %s2963_s29 }
 0x10d   : > { %2544 = vrot.lane.b32.xlu0 %v3252_v47, %s2964_s13 }
 0x10f   : > { %2529 = vrot.lane.b32.xlu1 %v3214_v33, %s2963_s29 }
 0x111   : > { %2554 = vrot.lane.b32.xlu0 %v3269_v55, %s2964_s13 }
 0x113   : > { %2539 = vrot.lane.b32.xlu1 %v3243_v44, %s2963_s29 }
 0x115   : > { %2564 = vrot.lane.b32.xlu0 %v3230_v40, %s2964_s13 }
 0x117   : > { %2549 = vrot.lane.b32.xlu1 %v3214_v33, %s2964_s13 }
 0x119   : > { %2574 = vrot.lane.b32.xlu0 %v3214_v33, %s2965_s12 }
 0x11b   : > { %2559 = vrot.lane.b32.xlu1 %v2558_v22, %s2964_s13 }
 0x11d   : > { %2584 = vrot.lane.b32.xlu0 %v2558_v22, %s2965_s12 }
 0x11f   : > { %2569 = vrot.lane.b32.xlu1 %v3252_v47, %s2965_s12 }
 0x121   : > { %2594 = vrot.lane.b32.xlu0 %v3252_v47, %s2966_s16 }
 0x123   : > { %2579 = vrot.lane.b32.xlu1 %v3269_v55, %s2965_s12 }
 0x125   : > { %2604 = vrot.lane.b32.xlu0 %v3269_v55, %s2966_s16 }
 0x127   : > { %2589 = vrot.lane.b32.xlu1 %v3230_v40, %s2965_s12 }
 0x129   : > { %2614 = vrot.lane.b32.xlu0 %v3230_v40, %s2966_s16 }
 0x12b   : > { %2599 = vrot.lane.b32.xlu1 %v3214_v33, %s2966_s16 }
 0x12d   : > { %2624 = vrot.lane.b32.xlu0 %v3214_v33, %s2967_s17  ;;  %v2312_v33 = vcombine.high %v308_v28, %v308_v28 }
 0x12f   : > { %2609 = vrot.lane.b32.xlu1 %v2558_v22, %s2966_s16  ;;  %v3445_v53 = vpack.i.b16 %v2312_v33, %v2312_v33  ;;  %v613_v6 = vshrl.u32 %v2312_v33, 16 }
 0x131   : > { %2634 = vrot.lane.b32.xlu0 %v2558_v22, %s2967_s17 }
 0x133   : > { %2619 = vrot.lane.b32.xlu1 %v3252_v47, %s2967_s17  ;;  %v310_v47 = vld [vmem:[#allocation5 + $0x10] sm:$0xff] }
 0x134   : > { %v3468_v60 = vcombine.low %v310_v47, %v310_v47  ;;  %v3470_v61 = vcombine.high %v310_v47, %v310_v47 }
 0x135   : > { %2644 = vrot.lane.b32.xlu0 %v2558_v22, %s2960_s7 }
 0x137   : > { %2629 = vrot.lane.b32.xlu1 %v3269_v55, %s2967_s17  ;;  %v3453_v55 = vpack.i.b16 %v3429_v35, %v3429_v35 }
 0x139   : > { %2654 = vrot.lane.b32.xlu0 %v3386_v25, %s2960_s7  ;;  %v491_v11 = vrot.slane %v3453_v55, %v3440_v50 }
 0x13b   : > { %2639 = vrot.lane.b32.xlu1 %v3230_v40, %s2967_s17 }
 0x13d   : > { %2664 = vrot.lane.b32.xlu0 %v3396_v26, %s2961_s14 }
 0x13f   : > { %2649 = vrot.lane.b32.xlu1 %v3396_v26, %s2960_s7 }
 0x141   : > { %2674 = vrot.lane.b32.xlu0 %v2558_v22, %s2962_s20 }
 0x143   : > { %2659 = vrot.lane.b32.xlu1 %v2558_v22, %s2961_s14 }
 0x145   : > { %2684 = vrot.lane.b32.xlu0 %v3386_v25, %s2962_s20 }
 0x147   : > { %2669 = vrot.lane.b32.xlu1 %v3386_v25, %s2961_s14  ;;  %s4813_s14 = scalar_lea.hbm %s4866_s6, %s2360_s11 }
 0x149   : > { %2694 = vrot.lane.b32.xlu0 %v3396_v26, %s2963_s29 }
 0x14b   : > { %2679 = vrot.lane.b32.xlu1 %v3396_v26, %s2962_s20 }
 0x14d   : > { %2704 = vrot.lane.b32.xlu0 %v3396_v26, %s2964_s13 }
 0x14f   : > { %2689 = vrot.lane.b32.xlu1 %v2558_v22, %s2963_s29 }
 0x151   : > { %2714 = vrot.lane.b32.xlu0 %v3243_v44, %s2964_s13 }
 0x153   : > { %2699 = vrot.lane.b32.xlu1 %v3386_v25, %s2963_s29  ;;  %s2974_s29 = smov [#allocation7]  }
 0x155   : > { %2724 = vrot.lane.b32.xlu0 %v3386_v25, %s2965_s12 }
 0x157   : > { %2709 = vrot.lane.b32.xlu1 %v3386_v25, %s2964_s13  ;;  %s2883_s13 = sshll.u32 %s2974_s29, 4  ;;  %s2884_s13 = int_to_ptr.vmem [resolvable:$false] %s2883_s13 }
 0x159   : > { %2734 = vrot.lane.b32.xlu0 %v3396_v26, %s2966_s16 }
 0x15b   : > { %2719 = vrot.lane.b32.xlu1 %v3396_v26, %s2965_s12  ;;  %v2455_v40 = vpop.permute.xlu0 %2454 }
 0x15c   : > { %v2457_v46 = vunpack.i.h.bf16 %v2455_v40  ;;  %v2456_v33 = vunpack.i.l.bf16 %v2455_v40 }
 0x15d   : > { %v2445_v49 = vpop.permute.xlu1 %2444  ;;  %2744 = vrot.lane.b32.xlu0 %v3243_v44, %s2966_s16 }
 0x15e   : > { %v2447_v62 = vunpack.i.h.bf16 %v2445_v49  ;;  %v2446_v63 = vunpack.i.l.bf16 %v2445_v49  ;;  %v498_v49 = vrot.slane %v3445_v53, %v3440_v50 }
 0x15f   : > { %2729 = vrot.lane.b32.xlu1 %v3243_v44, %s2965_s12  ;;  %v3465_v59 = vpop.permute.xlu0 %2464  ;;  %s2885_s12 = scalar_lea.vmem %s2884_s13, 2048 }
 0x160   : > { %4942 = vst [vmem:[#allocation12_spill] sm:$0xff] %v3465_v59  ;;  %v4874_v4 = vunpack.i.h.bf16 %v3465_v59  ;;  %v4873_v3 = vunpack.i.l.bf16 %v3465_v59 }
 0x161   : > { %v2450_v5 = vpop.permute.xlu1 %2449  ;;  %2754 = vrot.lane.b32.xlu0 %v3386_v25, %s2967_s17 }
 0x162   : > { %v2452_v23 = vunpack.i.h.bf16 %v2450_v5  ;;  %v2451_v27 = vunpack.i.l.bf16 %v2450_v5  ;;  %v455_v28 = vsel %vm440_vm2, %v4873_v3, %v2446_v63  ;;  %v456_v30 = vsel %vm440_vm2, %v4874_v4, %v2447_v62 }
 0x163   : > { %2739 = vrot.lane.b32.xlu1 %v3386_v25, %s2966_s16  ;;  %v3490_v47 = vpop.permute.xlu0 %2474  ;;  %v457_v5 = vpack.c.bf16 %v456_v30, %v455_v28  ;;  %v627_v25 = vshrl.u32 %v3427_v34, 16  ;;  %v4883_v4 = vmov 2  }
 0x164   : > { %v453_v24 = vsel %vm440_vm2, %v2446_v63, %v2451_v27  ;;  %v454_v3 = vsel %vm440_vm2, %v2447_v62, %v2452_v23  ;;  %v451_v20 = vsel %vm440_vm2, %v2451_v27, %v2456_v33  ;;  %v452_v28 = vsel %vm440_vm2, %v2452_v23, %v2457_v46 }
 0x165   : > { %v3500_v21 = vpop.permute.xlu1 %2459  ;;  %v458_v40 = vpack.c.bf16 %v454_v3, %v453_v24  ;;  %v541_v18 = vmul.bf16 %v491_v11, %v457_v5  ;;  %v3511_v62 = vpack.i.b16 %v3461_v58, %v3461_v58  ;;  %v512_v3 = vrot.slane %v3449_v54, %v3440_v50 }
 0x166   : > { %4943 = vst [vmem:[#allocation13_spill] sm:$0xff] %v3500_v21  ;;  %v4876_v30 = vunpack.i.h.bf16 %v3500_v21  ;;  %v4875_v63 = vunpack.i.l.bf16 %v3500_v21  ;;  %v3519_v27 = vpack.i.b16 %v613_v6, %v613_v6  ;;  %v620_v23 = vshrl.u32 %v3431_v39, 16 }
 0x167   : > { %2749 = vrot.lane.b32.xlu1 %v3396_v26, %s2967_s17  ;;  %v3515_v24 = vpop.permute.xlu0 %2484  ;;  %v542_v34 = vmul.bf16 %v498_v49, %v458_v40  ;;  %v459_v5 = vpack.c.bf16 %v452_v28, %v451_v20  ;;  %v505_v49 = vrot.slane %v3457_v56, %v3440_v50  ;;  %v3535_v40 = vpack.i.b16 %v627_v25, %v627_v25 }
 0x168   : > { %4944 = vst [vmem:[#allocation14_spill] sm:$0xff] %v3515_v24  ;;  %v449_v11 = vsel %vm440_vm2, %v2456_v33, %v4875_v63  ;;  %v450_v26 = vsel %vm440_vm2, %v2457_v46, %v4876_v30  ;;  %v2477_v33 = vunpack.i.h.bf16 %v3490_v47  ;;  %v2476_v63 = vunpack.i.l.bf16 %v3490_v47 }
 0x169   : > { %v3533_v6 = vpop.permute.xlu1 %2469  ;;  %1359 = vmatprep.subr.bf16.mxu0 %v542_v34  ;;  %v460_v39 = vpack.c.bf16 %v450_v26, %v449_v11  ;;  %v619_v25 = vrot.slane %v3519_v27, %v3440_v50  ;;  %v3548_v11 = vpack.i.b16 %v620_v23, %v620_v23  ;;  %v543_v26 = vmul.bf16 %v505_v49, %v459_v5 }
 0x16a   : > { %v2472_v46 = vunpack.i.h.bf16 %v3533_v6  ;;  %v2471_v20 = vunpack.i.l.bf16 %v3533_v6  ;;  %1360 = vmatpush1.bf16.msra.mxu0 %v541_v18  ;;  %v4877_v6 = vmov 1   ;;  %v3559_v23 = vpack.i.b16 %v606_v17, %v606_v17 }
 0x16b   : > { %2759 = vrot.lane.b32.xlu1 %v3243_v44, %s2967_s17  ;;  %v3544_v28 = vpop.permute.xlu0 %2494  ;;  %v544_v34 = vmul.bf16 %v512_v3, %v460_v39  ;;  %2763 = vset.pattern.permute.xlu0 %v4877_v6  ;;  %v3557_v44 = vsub.s32 1, %v3425_v32  ;;  %v3563_v39 = vpack.i.b16 %v3470_v61, %v3470_v61  ;;  %v4881_v5 = vunpack.i.h.bf16 %v3515_v24 }
 0x16c   : > { %v595_v35 = vsel %vm581_vm1, %v2472_v46, %v2477_v33  ;;  %v594_v47 = vsel %vm581_vm1, %v2471_v20, %v2476_v63  ;;  %2764 = vset.pattern.permute.xlu1 %v4877_v6  ;;  %1532 = vperm.xlu0 %2763, %v3169_v1   ;;  %v4882_v49 = vunpack.i.l.bf16 %v3515_v24  ;;  %v633_v17 = vrot.slane %v3535_v40, %v3440_v50 }
 0x16d   : > { %v2480_v18 = vpop.permute.xlu1 %2479  ;;  %1402 = vmatprep.subr.bf16.mxu1 %v544_v34  ;;  %v599_v3 = vpack.c.bf16 %v595_v35, %v594_v47  ;;  %v626_v34 = vrot.slane %v3548_v11, %v3440_v50 }
 0x16e   : > { %v2482_v30 = vunpack.i.h.bf16 %v2480_v18  ;;  %v2481_v6 = vunpack.i.l.bf16 %v2480_v18  ;;  %1403 = vmatpush1.bf16.msra.mxu1 %v543_v26 }
 0x16f   : > { %v3568_v16 = vpop.permute.xlu0 %2504  ;;  %v663_v12 = vmul.bf16 %v619_v25, %v599_v3  ;;  %1536 = vperm.xlu1 %2764, %v3175_v2  }
 0x170   : > { %v591_v35 = vsel %vm581_vm1, %v2482_v30, %v4881_v5  ;;  %v593_v47 = vsel %vm581_vm1, %v2477_v33, %v2482_v30  ;;  %v590_v25 = vsel %vm581_vm1, %v2481_v6, %v4882_v49  ;;  %v592_v26 = vsel %vm581_vm1, %v2476_v63, %v2481_v6  ;;  %2766 = vset.pattern.permute.xlu0 %v4883_v4 }
 0x171   : > { %v3587_v18 = vpop.permute.xlu1 %2489  ;;  %1361 = vmatprep.subr.bf16.mxu0 %v663_v12  ;;  %v601_v3 = vpack.c.bf16 %v591_v35, %v590_v25  ;;  %v600_v0 = vpack.c.bf16 %v593_v47, %v592_v26  ;;  %v612_v63 = vrot.slane %v3559_v23, %v3440_v50  ;;  %v734_v12 = vrot.slane %v3445_v53, %v3557_v44 }
 0x172   : > { %4945 = vst [vmem:[#allocation15_spill] sm:$0xff] %v3587_v18  ;;  %v4884_v30 = vunpack.i.h.bf16 %v3587_v18  ;;  %v4885_v33 = vunpack.i.l.bf16 %v3587_v18  ;;  %1560 = vperm.xlu0 %2766, %v3175_v2   ;;  %v2497_v6 = vunpack.i.h.bf16 %v3544_v28  ;;  %v2496_v35 = vunpack.i.l.bf16 %v3544_v28 }
 0x173   : > { %v3602_v47 = vpop.permute.xlu0 %2514  ;;  %v665_v25 = vmul.bf16 %v633_v17, %v601_v3  ;;  %v664_v26 = vmul.bf16 %v626_v34, %v600_v0  ;;  %2765 = vset.pattern.permute.xlu1 %v4883_v4  ;;  %v730_v34 = vrot.slane %v3453_v55, %v3557_v44 }
 0x174   : > { %4946 = vst [vmem:[#allocation16_spill] sm:$0xff] %v3602_v47  ;;  %v596_v49 = vsel %vm581_vm1, %v4885_v33, %v2471_v20  ;;  %v597_v5 = vsel %vm581_vm1, %v4884_v30, %v2472_v46  ;;  %v4887_v10 = vunpack.i.h.bf16 %v3602_v47  ;;  %v4886_v28 = vunpack.i.l.bf16 %v3602_v47  ;;  %1556 = vperm.xlu1 %2765, %v3169_v1  }
 0x175   : > { %v2500_v17 = vpop.permute.xlu1 %2499  ;;  %1404 = vmatprep.subr.bf16.mxu1 %v665_v25  ;;  %v598_v0 = vpack.c.bf16 %v597_v5, %v596_v49  ;;  %v4888_v30 = vmov 4   ;;  %v2507_v5 = vunpack.i.h.bf16 %v3568_v16  ;;  %v2506_v49 = vunpack.i.l.bf16 %v3568_v16 }
 0x176   : > { %v717_v20 = vsel %vm702_vm3, %v4886_v28, %v2496_v35  ;;  %v718_v46 = vsel %vm702_vm3, %v4887_v10, %v2497_v6  ;;  %v2502_v3 = vunpack.i.h.bf16 %v2500_v17  ;;  %v2501_v4 = vunpack.i.l.bf16 %v2500_v17  ;;  %1405 = vmatpush1.bf16.msra.mxu1 %v664_v26  ;;  %2768 = vset.pattern.permute.xlu0 %v4888_v30 }
 0x177   : > { %v3629_v25 = vpop.permute.xlu0 %2524  ;;  %v662_v33 = vmul.bf16 %v612_v63, %v598_v0  ;;  %v719_v22 = vpack.c.bf16 %v718_v46, %v717_v20  ;;  %1636 = vperm.xlu0 %2768, %v3169_v1   ;;  %v3638_v26 = vpack.i.b16 %v3459_v57, %v3459_v57  ;;  %v3642_v10 = vpack.i.b16 %v3468_v60, %v3468_v60 }
 0x178   : > { %v716_v28 = vsel %vm702_vm3, %v2497_v6, %v2502_v3  ;;  %v715_v17 = vsel %vm702_vm3, %v2496_v35, %v2501_v4  ;;  %v4890_v16 = vmov 3   ;;  %v714_v63 = vsel %vm702_vm3, %v2502_v3, %v2507_v5 }
 0x179   : > { %4947 = vst [vmem:[#allocation17_spill] sm:$0xff] %v3642_v10  ;;  %2767 = vset.pattern.permute.xlu1 %v4890_v16  ;;  %v713_v6 = vsel %vm702_vm3, %v2501_v4, %v2506_v49  ;;  %v3649_v0 = vpop.permute.xlu1 %2509  ;;  %1362 = vmatpush1.bf16.msra.mxu0 %v662_v33  ;;  %v720_v35 = vpack.c.bf16 %v716_v28, %v715_v17  ;;  %v2972_v28 = vmov 5  }
 0x17a   : > { %4948 = vst [vmem:[#allocation18_spill] sm:$0xff] %v3649_v0  ;;  %1596 = vperm.xlu1 %2767, %v3169_v1   ;;  %v4896_v20 = vunpack.i.h.bf16 %v3649_v0  ;;  %v4897_v46 = vunpack.i.l.bf16 %v3649_v0  ;;  %v759_v30 = vmul.bf16 %v730_v34, %v719_v22  ;;  %v742_v3 = vrot.slane %v3449_v54, %v3557_v44 }
 0x17b   : > { %v3654_v9 = vpop.permute.xlu0 %2534  ;;  %v760_v16 = vmul.bf16 %v734_v12, %v720_v35  ;;  %v875_v4 = vrot.slane %v3453_v55, %v3443_v51  ;;  %v895_v33 = vrot.slane %v3563_v39, %v3443_v51  ;;  %2771 = vset.pattern.permute.xlu0 %v2972_v28  ;;  %v721_v12 = vpack.c.bf16 %v714_v63, %v713_v6 }
 0x17c   : > { %v712_v17 = vsel %vm702_vm3, %v2507_v5, %v4896_v20  ;;  %v711_v22 = vsel %vm702_vm3, %v2506_v49, %v4897_v46  ;;  %v738_v34 = vrot.slane %v3457_v56, %v3557_v44  ;;  %1680 = vperm.xlu0 %2771, %v3175_v2   ;;  %v891_v47 = vrot.slane %v3642_v10, %v3443_v51 }
 0x17d   : > { %v2520_v35 = vpop.permute.xlu1 %2519  ;;  %1363 = vmatprep.subr.bf16.mxu0 %v760_v16  ;;  %v722_v18 = vpack.c.bf16 %v712_v17, %v711_v22  ;;  %v903_v5 = vrot.slane %v3511_v62, %v3443_v51  ;;  %v2527_v49 = vunpack.i.h.bf16 %v3629_v25  ;;  %v2526_v63 = vunpack.i.l.bf16 %v3629_v25 }
 0x17e   : > { %1600 = vperm.xlu1 %2767, %v3175_v2   ;;  %v2522_v6 = vunpack.i.h.bf16 %v2520_v35  ;;  %v2521_v20 = vunpack.i.l.bf16 %v2520_v35  ;;  %1364 = vmatpush1.bf16.msra.mxu0 %v759_v30  ;;  %v831_v16 = vrot.slane %v3519_v27, %v3557_v44  ;;  %v4949_v17 = vpack.c.bf16 %v3254_v48, %v3261_v52 }
 0x17f   : > { %v3681_v46 = vpop.permute.xlu0 %2544  ;;  %v762_v24 = vmul.bf16 %v742_v3, %v722_v18  ;;  %v4950_v22 = vrot.slane %v3449_v54, %v3443_v51  ;;  %v899_v25 = vrot.slane %v3638_v26, %v3443_v51  ;;  %v761_v3 = vmul.bf16 %v738_v34, %v721_v12 }
 0x180   : > { %v813_v30 = vsel %vm799_vm4, %v2522_v6, %v2527_v49  ;;  %v812_v18 = vsel %vm799_vm4, %v2521_v20, %v2526_v63  ;;  %v4951_v35 = vpack.c.bf16 %v3236_v42, %v3245_v45  ;;  %v4952_v48 = vrot.slane %v3445_v53, %v3443_v51 }
 0x181   : > { %v3691_v0 = vmul.bf16 %v4950_v22, %v4949_v17  ;;  %v4953_v17 = vmov 0   ;;  %v3709_v22 = vsub.s32 3, %v3425_v32  ;;  %v2530_v59 = vpop.permute.xlu1 %2529  ;;  %1406 = vmatprep.subr.bf16.mxu1 %v762_v24  ;;  %v817_v21 = vpack.c.bf16 %v813_v30, %v812_v18 }
 0x182   : > { %v3705_v52 = vmul.bf16 %v4952_v48, %v4951_v35  ;;  %2773 = vset.pattern.permute.xlu0 %v4953_v17  ;;  %v4954_v10 = vpack.c.bf16 %v3205_v29, %v3209_v31  ;;  %v4955_v12 = vrot.slane %v3457_v56, %v3443_v51  ;;  %v4956_v45 = vpack.c.bf16 %v3223_v38, %v3221_v37 }
 0x183   : > { %v4957_v35 = vmov 4   ;;  %v4921_v32 = vunpack.i.h.bf16 %v3654_v9  ;;  %v4920_v24 = vunpack.i.l.bf16 %v3654_v9  ;;  %v2532_v30 = vunpack.i.h.bf16 %v2530_v59  ;;  %1407 = vmatpush1.bf16.msra.mxu1 %v761_v3  ;;  %v3728_v29 = vpop.permute.xlu0 %2554 }
 0x184   : > { %v3717_v42 = vmul.bf16 %v4955_v12, %v4954_v10  ;;  %v3722_v34 = vmul.bf16 %v875_v4, %v4956_v45  ;;  %2769 = vset.pattern.permute.xlu1 %v4957_v35  ;;  %v2531_v18 = vunpack.i.l.bf16 %v2530_v59  ;;  %v857_v31 = vmul.bf16 %v831_v16, %v817_v21 }
 0x185   : > { %1640 = vperm.xlu1 %2769, %v3175_v2   ;;  %v839_v10 = vrot.slane %v3535_v40, %v3557_v44  ;;  %v835_v37 = vrot.slane %v3548_v11, %v3557_v44  ;;  %v4958_v38 = vpack.c.bf16 %v3295_v8, %v3310_v14  ;;  %v809_v59 = vsel %vm799_vm4, %v2532_v30, %v4921_v32  ;;  %v3751_v3 = vpop.permute.xlu1 %2539 }
 0x186   : > { %v811_v2 = vsel %vm799_vm4, %v2527_v49, %v2532_v30  ;;  %v808_v21 = vsel %vm799_vm4, %v2531_v18, %v4920_v24  ;;  %v810_v16 = vsel %vm799_vm4, %v2526_v63, %v2531_v18  ;;  %1365 = vmatprep.subr.bf16.mxu0 %v857_v31  ;;  %v4960_v49 = vpack.c.bf16 %v3218_v36, %v3233_v41 }
 0x187   : > { %v3737_v4 = vmul.bf16 %v895_v33, %v4958_v38  ;;  %v819_v8 = vpack.c.bf16 %v809_v59, %v808_v21  ;;  %v818_v14 = vpack.c.bf16 %v811_v2, %v810_v16  ;;  %v4959_v33 = vpack.c.bf16 %v3293_v7, %v3307_v13  ;;  %v3771_v7 = vpop.permute.xlu0 %2564  ;;  %v3795_v59 = vld [vmem:[#allocation5 + $0x20] sm:$0x11] }
 0x188   : > { %v3761_v12 = vmul.bf16 %v903_v5, %v4960_v49  ;;  %v4908_v45 = vunpack.i.h.bf16 %v3751_v3  ;;  %v4909_v30 = vunpack.i.l.bf16 %v3751_v3  ;;  %v4961_v63 = vpack.c.bf16 %v3312_v15, %v3322_v19 }
 0x189   : > { %v3756_v48 = vmul.bf16 %v891_v47, %v4959_v33  ;;  %2770 = vset.pattern.permute.xlu1 %v2972_v28  ;;  %v859_v13 = vmul.bf16 %v839_v10, %v819_v8  ;;  %v858_v47 = vmul.bf16 %v835_v37, %v818_v14  ;;  %v827_v36 = vrot.slane %v3559_v23, %v3557_v44  ;;  %v2550_v5 = vpop.permute.xlu1 %2549 }
 0x18a   : > { %v3769_v18 = vmul.bf16 %v899_v25, %v4961_v63  ;;  %1676 = vperm.xlu1 %2770, %v3169_v1   ;;  %v814_v41 = vsel %vm799_vm4, %v4909_v30, %v2521_v20  ;;  %v815_v15 = vsel %vm799_vm4, %v4908_v45, %v2522_v6  ;;  %v4910_v19 = vunpack.i.h.bf16 %v3771_v7  ;;  %v313_v63 = vld [vmem:[#allocation5 + $0x28] sm:$0x11] }
 0x18b   : > { %v4911_v28 = vunpack.i.l.bf16 %v3771_v7  ;;  %1408 = vmatprep.subr.bf16.mxu1 %v859_v13  ;;  %v816_v25 = vpack.c.bf16 %v815_v15, %v814_v41  ;;  %v976_v1 = vrot.slane %v3519_v27, %v3443_v51  ;;  %v972_v20 = vrot.slane %v3559_v23, %v3443_v51  ;;  %v3800_v16 = vpop.permute.xlu0 %2574  ;;  %v2802_v13 = vld [vmem:[%s4864_s4] sm:$0xff] }
 0x18c   : > { %v984_v31 = vrot.slane %v3535_v40, %v3443_v51  ;;  %v2547_v6 = vunpack.i.h.bf16 %v3681_v46  ;;  %v2546_v10 = vunpack.i.l.bf16 %v3681_v46  ;;  %v2552_v37 = vunpack.i.h.bf16 %v2550_v5  ;;  %1409 = vmatpush1.bf16.msra.mxu1 %v858_v47 }
 0x18d   : > { %v2551_v38 = vunpack.i.l.bf16 %v2550_v5  ;;  %v2557_v2 = vunpack.i.h.bf16 %v3728_v29  ;;  %v2556_v21 = vunpack.i.l.bf16 %v3728_v29  ;;  %1410 = vmatprep.subr.bf16.mxu1 %v3691_v0  ;;  %v856_v8 = vmul.bf16 %v827_v36, %v816_v25  ;;  %v3823_v41 = vpop.permute.xlu1 %2559 }
 0x18e   : > { %v980_v14 = vrot.slane %v3548_v11, %v3443_v51  ;;  %v2973_v33 = vmov 6   ;;  %v957_v46 = vsel %vm944_vm5, %v4911_v28, %v2546_v10  ;;  %v958_v29 = vsel %vm944_vm5, %v4910_v19, %v2547_v6 }
 0x18f   : > { %2772 = vset.pattern.permute.xlu1 %v2973_v33  ;;  %v956_v0 = vsel %vm944_vm5, %v2547_v6, %v2552_v37  ;;  %v955_v49 = vsel %vm944_vm5, %v2546_v10, %v2551_v38  ;;  %v954_v47 = vsel %vm944_vm5, %v2552_v37, %v2557_v2  ;;  %v953_v36 = vsel %vm944_vm5, %v2551_v38, %v2556_v21  ;;  %v3835_v38 = vpop.permute.xlu0 %2584 }
 0x190   : > { %1700 = vperm.xlu1 %2772, %v2802_v13   ;;  %1366 = vmatpush1.bf16.msra.mxu0 %v856_v8  ;;  %v962_v15 = vpack.c.bf16 %v956_v0, %v955_v49  ;;  %v2320_v5 = vcombine.high %v3795_v59, %v3795_v59  ;;  %v4922_v25 = vunpack.i.h.bf16 %v3823_v41  ;;  %v4923_v6 = vunpack.i.l.bf16 %v3823_v41 }
 0x191   : > { %1367 = vmatprep.subr.bf16.mxu0 %v3705_v52  ;;  %1411 = vmatpush1.bf16.msra.mxu1 %v3717_v42  ;;  %v1073_v10 = vrot.slane %v3445_v53, %v3709_v22  ;;  %v1081_v37 = vrot.slane %v3449_v54, %v3709_v22  ;;  %v961_v33 = vpack.c.bf16 %v958_v29, %v957_v46  ;;  %v2570_v46 = vpop.permute.xlu1 %2569 }
 0x192   : > { %v1002_v8 = vmul.bf16 %v976_v1, %v962_v15  ;;  %v2322_v0 = vcombine.high %v313_v63, %v313_v63  ;;  %v2321_v49 = vcombine.low %v313_v63, %v313_v63  ;;  %v952_v13 = vsel %vm944_vm5, %v2557_v2, %v4922_v25  ;;  %v2803_v1 = vld [vmem:[%s4864_s4 + $0x8] sm:$0xff] }
 0x193   : > { %v951_v52 = vsel %vm944_vm5, %v2556_v21, %v4923_v6  ;;  %v963_v53 = vpack.c.bf16 %v954_v47, %v953_v36  ;;  %v1077_v42 = vrot.slane %v3457_v56, %v3709_v22  ;;  %v1069_v2 = vrot.slane %v3453_v55, %v3709_v22  ;;  %v3857_v45 = vpop.permute.xlu0 %2594 }
 0x194   : > { %1704 = vperm.xlu1 %2772, %v2803_v1   ;;  %1368 = vmatpush1.bf16.msra.mxu0 %v3722_v34  ;;  %v964_v29 = vpack.c.bf16 %v952_v13, %v951_v52  ;;  %v1170_v63 = vrot.slane %v3519_v27, %v3709_v22  ;;  %v1288_v21 = vpack.i.b16 %v2320_v5, %v2320_v5  ;;  %v2577_v47 = vunpack.i.h.bf16 %v3800_v16 }
 0x195   : > { %v2576_v56 = vunpack.i.l.bf16 %v3800_v16  ;;  %v2572_v36 = vunpack.i.h.bf16 %v2570_v46  ;;  %v2571_v15 = vunpack.i.l.bf16 %v2570_v46  ;;  %1369 = vmatprep.subr.bf16.mxu0 %v1002_v8  ;;  %v1001_v1 = vmul.bf16 %v972_v20, %v961_v33  ;;  %v2580_v16 = vpop.permute.xlu1 %2579 }
 0x196   : > { %v1004_v30 = vmul.bf16 %v984_v31, %v964_v29  ;;  %v1302_v34 = vpack.i.b16 %v2322_v0, %v2322_v0  ;;  %v1295_v13 = vpack.i.b16 %v2321_v49, %v2321_v49  ;;  %v1003_v5 = vmul.bf16 %v980_v14, %v963_v53 }
 0x197   : > { %v1053_v52 = vsel %vm1041_vm6, %v2572_v36, %v2577_v47  ;;  %v1052_v19 = vsel %vm1041_vm6, %v2571_v15, %v2576_v56  ;;  %v1166_v28 = vrot.slane %v3559_v23, %v3709_v22  ;;  %v1178_v20 = vrot.slane %v3535_v40, %v3709_v22  ;;  %v3873_v53 = vpop.permute.xlu0 %2604 }
 0x198   : > { %2774 = vset.pattern.permute.xlu1 %v4953_v17  ;;  %1370 = vmatpush1.bf16.msra.mxu0 %v1001_v1  ;;  %v1059_v8 = vpack.c.bf16 %v1053_v52, %v1052_v19  ;;  %v1174_v31 = vrot.slane %v3548_v11, %v3709_v22  ;;  %v4913_v33 = vunpack.i.h.bf16 %v3835_v38  ;;  %v4912_v14 = vunpack.i.l.bf16 %v3835_v38 }
 0x199   : > { %1412 = vmatprep.subr.bf16.mxu1 %v1004_v30  ;;  %v2582_v0 = vunpack.i.h.bf16 %v2580_v16  ;;  %v2581_v49 = vunpack.i.l.bf16 %v2580_v16  ;;  %v3876_v30 = vrot.slane %v1288_v21, %v3440_v50  ;;  %v3879_v19 = vrot.slane %v1302_v34, %v3440_v50  ;;  %v3896_v34 = vpop.permute.xlu1 %2589  ;;  %1984 = vperm.xlu1 %2774, %v307_v43  }
 0x19a   : > { %1413 = vmatpush1.bf16.msra.mxu1 %v1003_v5  ;;  %v1099_v46 = vmul.bf16 %v1073_v10, %v1059_v8  ;;  %v3882_v29 = vrot.slane %v1295_v13, %v3440_v50  ;;  %v2319_v16 = vcombine.low %v3795_v59, %v3795_v59  ;;  %v540_v8 = vrot.slane %v3511_v62, %v3440_v50 }
 0x19b   : > { %v1049_v1 = vsel %vm1041_vm6, %v2582_v0, %v4913_v33  ;;  %v1051_v52 = vsel %vm1041_vm6, %v2577_v47, %v2582_v0  ;;  %v1048_v10 = vsel %vm1041_vm6, %v2581_v49, %v4912_v14  ;;  %v1050_v21 = vsel %vm1041_vm6, %v2576_v56, %v2581_v49 }
 0x19c   : > { %1371 = vmatprep.subr.bf16.mxu0 %v1099_v46  ;;  %v1061_v13 = vpack.c.bf16 %v1049_v1, %v1048_v10  ;;  %v1060_v5 = vpack.c.bf16 %v1051_v52, %v1050_v21  ;;  %v4914_v47 = vunpack.i.h.bf16 %v3896_v34  ;;  %v4915_v0 = vunpack.i.l.bf16 %v3896_v34  ;;  %v3908_v46 = vpop.permute.xlu0 %2614 }
 0x19d   : > { %v641_v14 = vshrl.u32 %v3470_v61, 16  ;;  %v634_v33 = vshrl.u32 %v3468_v60, 16  ;;  %v2597_v56 = vunpack.i.h.bf16 %v3857_v45  ;;  %v2596_v49 = vunpack.i.l.bf16 %v3857_v45 }
 0x19e   : > { %v1101_v59 = vmul.bf16 %v1081_v37, %v1061_v13  ;;  %v1100_v1 = vmul.bf16 %v1077_v42, %v1060_v5  ;;  %v1054_v52 = vsel %vm1041_vm6, %v4915_v0, %v2571_v15  ;;  %v1055_v60 = vsel %vm1041_vm6, %v4914_v47, %v2572_v36  ;;  %v2600_v37 = vpop.permute.xlu1 %2599 }
 0x19f   : > { %v4916_v61 = vunpack.i.h.bf16 %v3908_v46  ;;  %v4917_v45 = vunpack.i.l.bf16 %v3908_v46  ;;  %v2607_v10 = vunpack.i.h.bf16 %v3873_v53  ;;  %v2606_v54 = vunpack.i.l.bf16 %v3873_v53 }
 0x1a0   : > { %1414 = vmatprep.subr.bf16.mxu1 %v1101_v59  ;;  %v1058_v42 = vpack.c.bf16 %v1055_v60, %v1054_v52  ;;  %v1281_v21 = vpack.i.b16 %v2319_v16, %v2319_v16  ;;  %v2602_v13 = vunpack.i.h.bf16 %v2600_v37  ;;  %v2601_v5 = vunpack.i.l.bf16 %v2600_v37  ;;  %v3934_v53 = vpop.permute.xlu0 %2624 }
 0x1a1   : > { %v1151_v15 = vsel %vm1138_vm7, %v4917_v45, %v2596_v49  ;;  %v1152_v36 = vsel %vm1138_vm7, %v4916_v61, %v2597_v56  ;;  %1415 = vmatpush1.bf16.msra.mxu1 %v1100_v1  ;;  %v3939_v52 = vpack.i.b16 %v641_v14, %v641_v14  ;;  %v3941_v60 = vpack.i.b16 %v634_v33, %v634_v33 }
 0x1a2   : > { %v1098_v59 = vmul.bf16 %v1069_v2, %v1058_v42  ;;  %v1155_v16 = vpack.c.bf16 %v1152_v36, %v1151_v15  ;;  %v1148_v47 = vsel %vm1138_vm7, %v2602_v13, %v2607_v10  ;;  %v1150_v0 = vsel %vm1138_vm7, %v2597_v56, %v2602_v13  ;;  %v3951_v61 = vpop.permute.xlu1 %2609  ;;  %v4962_v13 = vld [vmem:[#allocation17_spill] sm:$0xff] }
 0x1a3   : > { %v1147_v1 = vsel %vm1138_vm7, %v2601_v5, %v2606_v54  ;;  %v1149_v37 = vsel %vm1138_vm7, %v2596_v49, %v2601_v5  ;;  %v526_v2 = vrot.slane %v3563_v39, %v3440_v50  ;;  %v655_v33 = vshrl.u32 %v3461_v58, 16 }
 0x1a4   : > { %1372 = vmatpush1.bf16.msra.mxu0 %v1098_v59  ;;  %v1156_v55 = vpack.c.bf16 %v1150_v0, %v1149_v37  ;;  %v648_v14 = vshrl.u32 %v3459_v57, 16  ;;  %v4918_v42 = vunpack.i.h.bf16 %v3951_v61  ;;  %v4919_v56 = vunpack.i.l.bf16 %v3951_v61  ;;  %v3964_v36 = vpop.permute.xlu0 %2634 }
 0x1a5   : > { %v1195_v15 = vmul.bf16 %v1166_v28, %v1155_v16  ;;  %v533_v49 = vrot.slane %v3638_v26, %v3440_v50  ;;  %v1157_v58 = vpack.c.bf16 %v1148_v47, %v1147_v1  ;;  %v3970_v57 = vrot.slane %v1281_v21, %v3440_v50 }
 0x1a6   : > { %v1196_v0 = vmul.bf16 %v1170_v63, %v1156_v55  ;;  %v519_v5 = vrot.slane %v4962_v13, %v3440_v50  ;;  %v1146_v23 = vsel %vm1138_vm7, %v2607_v10, %v4918_v42  ;;  %v1145_v28 = vsel %vm1138_vm7, %v2606_v54, %v4919_v56  ;;  %v2620_v47 = vpop.permute.xlu1 %2619 }
 0x1a7   : > { %v647_v27 = vrot.slane %v3939_v52, %v3440_v50  ;;  %v640_v63 = vrot.slane %v3941_v60, %v3440_v50  ;;  %v1158_v21 = vpack.c.bf16 %v1146_v23, %v1145_v28  ;;  %v3986_v59 = vpack.i.b16 %v655_v33, %v655_v33 }
 0x1a8   : > { %1373 = vmatprep.subr.bf16.mxu0 %v1196_v0  ;;  %v3988_v16 = vpack.i.b16 %v648_v14, %v648_v14  ;;  %v2627_v1 = vunpack.i.h.bf16 %v3934_v53  ;;  %v2626_v54 = vunpack.i.l.bf16 %v3934_v53  ;;  %v2622_v37 = vunpack.i.h.bf16 %v2620_v47  ;;  %v3994_v45 = vpop.permute.xlu0 %2644 }
 0x1a9   : > { %v2621_v55 = vunpack.i.l.bf16 %v2620_v47  ;;  %1374 = vmatpush1.bf16.msra.mxu0 %v1195_v15  ;;  %v1198_v0 = vmul.bf16 %v1178_v20, %v1158_v21  ;;  %v1197_v33 = vmul.bf16 %v1174_v31, %v1157_v58  ;;  %v746_v23 = vrot.slane %v4962_v13, %v3557_v44  ;;  %v4966_v31 = vld [vmem:[#allocation12_spill] sm:$0xff] }
 0x1aa   : > { %v1247_v53 = vsel %vm1235_vm8, %v2622_v37, %v2627_v1  ;;  %v2647_v28 = vunpack.i.h.bf16 %v3994_v45  ;;  %v2646_v40 = vunpack.i.l.bf16 %v3994_v45  ;;  %v2630_v20 = vpop.permute.xlu1 %2629  ;;  %v654_v58 = vrot.slane %v3988_v16, %v3440_v50  ;;  %v4963_v45 = vld [vmem:[#allocation13_spill] sm:$0xff] }
 0x1ab   : > { %v1246_v15 = vsel %vm1235_vm8, %v2621_v55, %v2626_v54  ;;  %1416 = vmatprep.subr.bf16.mxu1 %v1198_v0  ;;  %v4924_v21 = vunpack.i.h.bf16 %v3964_v36  ;;  %v4925_v42 = vunpack.i.l.bf16 %v3964_v36  ;;  %v2632_v56 = vunpack.i.h.bf16 %v2630_v20 }
 0x1ac   : > { %v1253_v11 = vpack.c.bf16 %v1247_v53, %v1246_v15  ;;  %v2631_v14 = vunpack.i.l.bf16 %v2630_v20  ;;  %1417 = vmatpush1.bf16.msra.mxu1 %v1197_v33  ;;  %v4964_v24 = vunpack.i.l.bf16 %v4963_v45  ;;  %v4965_v53 = vunpack.i.h.bf16 %v4963_v45  ;;  %v2655_v32 = vpop.permute.xlu0 %2654 }
 0x1ad   : > { %v1243_v33 = vsel %vm1235_vm8, %v2632_v56, %v4924_v21  ;;  %v1245_v20 = vsel %vm1235_vm8, %v2627_v1, %v2632_v56  ;;  %v843_v1 = vrot.slane %v3941_v60, %v3557_v44 }
 0x1ae   : > { %v447_v0 = vsel %vm440_vm2, %v4964_v24, %v2646_v40  ;;  %v448_v15 = vsel %vm440_vm2, %v4965_v53, %v2647_v28  ;;  %v1337_v47 = vmul.bf16 %v3876_v30, %v1253_v11  ;;  %v1242_v24 = vsel %vm1235_vm8, %v2631_v14, %v4925_v42  ;;  %v4043_v53 = vpop.permute.xlu1 %2639 }
 0x1af   : > { %v1244_v45 = vsel %vm1235_vm8, %v2626_v54, %v2631_v14  ;;  %v2657_v30 = vunpack.i.h.bf16 %v2655_v32  ;;  %v2656_v11 = vunpack.i.l.bf16 %v2655_v32  ;;  %v1255_v10 = vpack.c.bf16 %v1243_v33, %v1242_v24 }
 0x1b0   : > { %1375 = vmatprep.subr.bf16.mxu0 %v1337_v47  ;;  %v1254_v25 = vpack.c.bf16 %v1245_v20, %v1244_v45  ;;  %v461_v6 = vpack.c.bf16 %v448_v15, %v447_v0  ;;  %v4926_v21 = vunpack.i.h.bf16 %v4043_v53  ;;  %v4927_v56 = vunpack.i.l.bf16 %v4043_v53  ;;  %v4057_v47 = vpop.permute.xlu0 %2664 }
 0x1b1   : > { %v4967_v42 = vunpack.i.h.bf16 %v4966_v31  ;;  %v4968_v32 = vunpack.i.l.bf16 %v4966_v31  ;;  %v1339_v0 = vmul.bf16 %v3879_v19, %v1255_v10  ;;  %v855_v31 = vrot.slane %v3986_v59, %v3557_v44 }
 0x1b2   : > { %v1338_v15 = vmul.bf16 %v3882_v29, %v1254_v25  ;;  %v1248_v33 = vsel %vm1235_vm8, %v4927_v56, %v2621_v55  ;;  %v851_v20 = vrot.slane %v3988_v16, %v3557_v44  ;;  %v2650_v24 = vpop.permute.xlu1 %2649  ;;  %v4076_v25 = vld [vmem:[%s4861_s1] ss:$8 sps:$4 sm:$0xff]  }
 0x1b3   : > { %v442_v54 = vsel %vm440_vm2, %v2657_v30, %v4967_v42  ;;  %v441_v14 = vsel %vm440_vm2, %v2656_v11, %v4968_v32  ;;  %v1249_v42 = vsel %vm1235_vm8, %v4926_v21, %v2622_v37  ;;  %1418 = vmatprep.subr.bf16.mxu1 %v1339_v0  ;;  %v2652_v55 = vunpack.i.h.bf16 %v2650_v24 }
 0x1b4   : > { %v1252_v19 = vpack.c.bf16 %v1249_v42, %v1248_v33  ;;  %v464_v29 = vpack.c.bf16 %v442_v54, %v441_v14  ;;  %v2651_v45 = vunpack.i.l.bf16 %v2650_v24  ;;  %1419 = vmatpush1.bf16.msra.mxu1 %v1338_v15  ;;  %v4086_v33 = vpop.permute.xlu0 %2674  ;;  %v545_v14 = vmul.bf16 %v519_v5, %v461_v6 }
 0x1b5   : > { %v444_v24 = vsel %vm440_vm2, %v2652_v55, %v2657_v30  ;;  %v446_v21 = vsel %vm440_vm2, %v2647_v28, %v2652_v55  ;;  %v2676_v6 = vunpack.i.l.bf16 %v4086_v33  ;;  %v2667_v30 = vunpack.i.h.bf16 %v4057_v47 }
 0x1b6   : > { %v1336_v42 = vmul.bf16 %v3970_v57, %v1252_v19  ;;  %v548_v54 = vmul.bf16 %v540_v8, %v464_v29  ;;  %v443_v57 = vsel %vm440_vm2, %v2651_v45, %v2656_v11  ;;  %v445_v19 = vsel %vm440_vm2, %v2646_v40, %v2651_v45  ;;  %v2660_v5 = vpop.permute.xlu1 %2659  ;;  %v2804_v40 = vld [vmem:[%s4861_s1 + $0x4] ss:$8 sps:$4 sm:$0xff]   ;;  %v4969_v11 = vld [vmem:[#allocation18_spill] sm:$0xff] }
 0x1b7   : > { %v463_v8 = vpack.c.bf16 %v444_v24, %v443_v57  ;;  %v2677_v29 = vunpack.i.h.bf16 %v4086_v33  ;;  %1435 = vmatmul.mubr.bf16.vlgmr.msra.gmra.mrb[0].mxu1 %v4076_v25  ;;  %v462_v56 = vpack.c.bf16 %v446_v21, %v445_v19  ;;  %v2666_v28 = vunpack.i.l.bf16 %v4057_v47 }
 0x1b8   : > { %1376 = vmatpush1.bf16.msra.mxu0 %v1336_v42  ;;  %v2662_v55 = vunpack.i.h.bf16 %v2660_v5  ;;  %v2661_v15 = vunpack.i.l.bf16 %v2660_v5  ;;  %1488 = vmatprep.subr.bf16.mxu1 %v548_v54  ;;  %v4970_v45 = vunpack.i.l.bf16 %v4969_v11  ;;  %v4971_v47 = vunpack.i.h.bf16 %v4969_v11  ;;  %v2685_v54 = vpop.permute.xlu0 %2684 }
 0x1b9   : > { %2332 = vmatprep.mubr.msk.bf16.mxu1 %vm1355_vm0, %v2804_v40  ;;  %v546_v24 = vmul.bf16 %v526_v2, %v462_v56  ;;  %v547_v57 = vmul.bf16 %v533_v49, %v463_v8  ;;  %v2687_v49 = vunpack.i.h.bf16 %v2685_v54  ;;  %v2686_v8 = vunpack.i.l.bf16 %v2685_v54 }
 0x1ba   : > { %v709_v21 = vsel %vm702_vm3, %v4970_v45, %v2676_v6  ;;  %v710_v42 = vsel %vm702_vm3, %v4971_v47, %v2677_v29  ;;  %v587_v5 = vsel %vm581_vm1, %v2662_v55, %v2667_v30  ;;  %v4972_v45 = vld [vmem:[#allocation14_spill] sm:$0xff]  ;;  %v586_v47 = vsel %vm581_vm1, %v2661_v15, %v2666_v28 }
 0x1bb   : > { %v723_v19 = vpack.c.bf16 %v710_v42, %v709_v21  ;;  %v4973_v0 = vunpack.i.h.bf16 %v4972_v45  ;;  %1392 = vmatmul.mubr.bf16.vlgmr.msra.gmra.mrb[0].mxu0 %v4076_v25  ;;  %v4974_v2 = vunpack.i.l.bf16 %v4972_v45  ;;  %v2670_v21 = vpop.permute.xlu1 %2669  ;;  %1445 = vmatprep.subr.bf16.mxu0 %v546_v24  ;;  %v603_v42 = vpack.c.bf16 %v587_v5, %v586_v47 }
 0x1bc   : > { %1489 = vmatpush1.bf16.msra.mxu1 %v547_v57  ;;  %v2672_v32 = vunpack.i.h.bf16 %v2670_v21  ;;  %v2671_v37 = vunpack.i.l.bf16 %v2670_v21  ;;  %1446 = vmatpush1.bf16.msra.mxu0 %v545_v14  ;;  %v4156_v57 = vpop.permute.xlu0 %2694  ;;  %v4982_v33 = vunpack.i.l.bf16 %v3823_v41 }
 0x1bd   : > { %v589_v11 = vsel %vm581_vm1, %v4973_v0, %v2662_v55  ;;  %v588_v56 = vsel %vm581_vm1, %v4974_v2, %v2661_v15  ;;  %v996_v0 = vrot.slane %v3988_v16, %v3443_v51  ;;  %2331 = vmatprep.mubr.msk.bf16.mxu0 %vm1355_vm0, %v2804_v40  ;;  %v4975_v55 = vld [vmem:[#allocation16_spill] sm:$0xff]  ;;  %v667_v14 = vmul.bf16 %v647_v27, %v603_v42 }
 0x1be   : > { %v602_v10 = vpack.c.bf16 %v589_v11, %v588_v56  ;;  %v4976_v45 = vunpack.i.l.bf16 %v4975_v55  ;;  %v4977_v54 = vunpack.i.h.bf16 %v4975_v55  ;;  %v585_v40 = vsel %vm581_vm1, %v2667_v30, %v2672_v32  ;;  %v4978_v11 = vld [vmem:[#allocation15_spill] sm:$0xff] }
 0x1bf   : > { %v4979_v47 = vunpack.i.l.bf16 %v4978_v11  ;;  %v4980_v56 = vunpack.i.h.bf16 %v4978_v11  ;;  %v584_v55 = vsel %vm581_vm1, %v2666_v28, %v2671_v37  ;;  %v2680_v42 = vpop.permute.xlu1 %2679  ;;  %1447 = vmatprep.subr.bf16.mxu0 %v667_v14  ;;  %v763_v14 = vmul.bf16 %v746_v23, %v723_v19 }
 0x1c0   : > { %v703_v15 = vsel %vm702_vm3, %v2686_v8, %v4976_v45  ;;  %v704_v24 = vsel %vm702_vm3, %v2687_v49, %v4977_v54  ;;  %v604_v27 = vpack.c.bf16 %v585_v40, %v584_v55  ;;  %v666_v30 = vmul.bf16 %v640_v63, %v602_v10  ;;  %v4185_v28 = vpop.permute.xlu0 %2704 }
 0x1c1   : > { %v582_v2 = vsel %vm581_vm1, %v2671_v37, %v4979_v47  ;;  %v583_v21 = vsel %vm581_vm1, %v2672_v32, %v4980_v56  ;;  %v1093_v45 = vrot.slane %v3638_v26, %v3709_v22  ;;  %v2682_v11 = vunpack.i.h.bf16 %v2680_v42 }
 0x1c2   : > { %v2681_v47 = vunpack.i.l.bf16 %v2680_v42  ;;  %v605_v5 = vpack.c.bf16 %v583_v21, %v582_v2  ;;  %v2697_v37 = vunpack.i.h.bf16 %v4156_v57  ;;  %1448 = vmatpush1.bf16.msra.mxu0 %v666_v30  ;;  %v668_v63 = vmul.bf16 %v654_v58, %v604_v27 }
 0x1c3   : > { %v726_v10 = vpack.c.bf16 %v704_v24, %v703_v15  ;;  %v706_v40 = vsel %vm702_vm3, %v2682_v11, %v2687_v49  ;;  %v708_v2 = vsel %vm702_vm3, %v2677_v29, %v2682_v11  ;;  %v2707_v24 = vunpack.i.h.bf16 %v4185_v28  ;;  %v2690_v19 = vpop.permute.xlu1 %2689 }
 0x1c4   : > { %v705_v56 = vsel %vm702_vm3, %v2681_v47, %v2686_v8  ;;  %v707_v58 = vsel %vm702_vm3, %v2676_v6, %v2681_v47  ;;  %v2706_v23 = vunpack.i.l.bf16 %v4185_v28  ;;  %v4981_v49 = vrot.slane %v3986_v59, %v3440_v50  ;;  %v2715_v11 = vpop.permute.xlu0 %2714 }
 0x1c5   : > { %v725_v15 = vpack.c.bf16 %v706_v40, %v705_v56  ;;  %v2696_v29 = vunpack.i.l.bf16 %v4156_v57  ;;  %v2692_v55 = vunpack.i.h.bf16 %v2690_v19  ;;  %v2691_v27 = vunpack.i.l.bf16 %v2690_v19 }
 0x1c6   : > { %v669_v21 = vmul.bf16 %v4981_v49, %v605_v5  ;;  %v724_v8 = vpack.c.bf16 %v708_v2, %v707_v58  ;;  %v4215_v6 = vsel %vm944_vm5, %v4982_v33, %v2706_v23  ;;  %v4983_v42 = vunpack.i.h.bf16 %v3823_v41 }
 0x1c7   : > { %v4984_v5 = vrot.slane %v3511_v62, %v3557_v44  ;;  %v4985_v47 = vrot.slane %v3638_v26, %v3557_v44  ;;  %v805_v41 = vsel %vm799_vm4, %v2692_v55, %v2697_v37  ;;  %v4986_v2 = vunpack.i.h.bf16 %v3654_v9  ;;  %v2700_v33 = vpop.permute.xlu1 %2699 }
 0x1c8   : > { %v4221_v30 = vsel %vm944_vm5, %v4983_v42, %v2707_v24  ;;  %1490 = vmatprep.subr.bf16.mxu1 %v669_v21  ;;  %v804_v58 = vsel %vm799_vm4, %v2691_v27, %v2696_v29  ;;  %v4987_v19 = vunpack.i.l.bf16 %v3654_v9  ;;  %v2717_v49 = vunpack.i.h.bf16 %v2715_v11 }
 0x1c9   : > { %v766_v57 = vmul.bf16 %v4984_v5, %v726_v10  ;;  %v765_v28 = vmul.bf16 %v4985_v47, %v725_v15  ;;  %v965_v40 = vpack.c.bf16 %v4221_v30, %v4215_v6  ;;  %v807_v56 = vsel %vm799_vm4, %v4986_v2, %v2692_v55  ;;  %1491 = vmatpush1.bf16.msra.mxu1 %v668_v63  ;;  %v314_v10 = vld [vmem:[#allocation5 + $0x30] sm:$0x11] }
 0x1ca   : > { %v806_v15 = vsel %vm799_vm4, %v4987_v19, %v2691_v27  ;;  %v2716_v21 = vunpack.i.l.bf16 %v2715_v11  ;;  %v4988_v42 = vrot.slane %v3563_v39, %v3557_v44  ;;  %v2702_v55 = vunpack.i.h.bf16 %v2700_v33 }
 0x1cb   : > { %1492 = vmatprep.subr.bf16.mxu1 %v766_v57  ;;  %v820_v47 = vpack.c.bf16 %v807_v56, %v806_v15  ;;  %v2701_v2 = vunpack.i.l.bf16 %v2700_v33  ;;  %v821_v32 = vpack.c.bf16 %v805_v41, %v804_v58  ;;  %v4989_v63 = vunpack.i.l.bf16 %v3771_v7  ;;  %v4254_v57 = vpop.permute.xlu0 %2724  ;;  %v315_v15 = vld [vmem:[#allocation5 + $0x38] sm:$0x11]  ;;  %v2710_v33 = vpop.permute.xlu1 %2709 }
 0x1cc   : > { %v764_v5 = vmul.bf16 %v4988_v42, %v724_v8  ;;  %v4990_v54 = vunpack.i.h.bf16 %v3771_v7  ;;  %v4256_v11 = vcombine.low %v314_v10, %v314_v10  ;;  %v4258_v8 = vcombine.high %v314_v10, %v314_v10 }
 0x1cd   : > { %v959_v9 = vsel %vm944_vm5, %v2716_v21, %v4989_v63  ;;  %v803_v41 = vsel %vm799_vm4, %v2697_v37, %v2702_v55  ;;  %v4991_v56 = vunpack.i.l.bf16 %v3751_v3  ;;  %v4992_v7 = vunpack.i.h.bf16 %v3751_v3  ;;  %1493 = vmatpush1.bf16.msra.mxu1 %v765_v28 }
 0x1ce   : > { %v960_v27 = vsel %vm944_vm5, %v2717_v49, %v4990_v54  ;;  %1449 = vmatprep.subr.bf16.mxu0 %v764_v5  ;;  %v802_v19 = vsel %vm799_vm4, %v2696_v29, %v2701_v2  ;;  %v4993_v37 = vrot.slane %v3939_v52, %v3557_v44  ;;  %v1182_v5 = vrot.slane %v3941_v60, %v3709_v22 }
 0x1cf   : > { %v800_v58 = vsel %vm799_vm4, %v2701_v2, %v4991_v56  ;;  %v801_v54 = vsel %vm799_vm4, %v2702_v55, %v4992_v7  ;;  %1450 = vmatpush1.bf16.msra.mxu0 %v763_v14  ;;  %v822_v10 = vpack.c.bf16 %v803_v41, %v802_v19  ;;  %v1190_v3 = vrot.slane %v3988_v16, %v3709_v22  ;;  %v4282_v28 = vpop.permute.xlu0 %2734 }
 0x1d0   : > { %v861_v42 = vmul.bf16 %v4993_v37, %v821_v32  ;;  %v2712_v63 = vunpack.i.h.bf16 %v2710_v33  ;;  %v2711_v55 = vunpack.i.l.bf16 %v2710_v33  ;;  %v860_v14 = vmul.bf16 %v843_v1, %v820_v47 }
 0x1d1   : > { %v823_v29 = vpack.c.bf16 %v801_v54, %v800_v58  ;;  %v968_v2 = vpack.c.bf16 %v960_v27, %v959_v9  ;;  %v1309_v32 = vpack.i.b16 %v4256_v11, %v4256_v11  ;;  %v1316_v41 = vpack.i.b16 %v4258_v8, %v4258_v8  ;;  %v2720_v27 = vpop.permute.xlu1 %2719 }
 0x1d2   : > { %1451 = vmatprep.subr.bf16.mxu0 %v861_v42  ;;  %v4288_v56 = vcombine.low %v315_v15, %v315_v15  ;;  %v946_v7 = vsel %vm944_vm5, %v2712_v63, %v2717_v49  ;;  %v948_v19 = vsel %vm944_vm5, %v2707_v24, %v2712_v63  ;;  %v945_v1 = vsel %vm944_vm5, %v2711_v55, %v2716_v21 }
 0x1d3   : > { %v947_v47 = vsel %vm944_vm5, %v2706_v23, %v2711_v55  ;;  %1452 = vmatpush1.bf16.msra.mxu0 %v860_v14  ;;  %v2727_v9 = vunpack.i.h.bf16 %v4254_v57  ;;  %v863_v11 = vmul.bf16 %v855_v31, %v823_v29  ;;  %v862_v24 = vmul.bf16 %v851_v20, %v822_v10  ;;  %v2745_v37 = vpop.permute.xlu0 %2744 }
 0x1d4   : > { %1453 = vmatprep.subr.bf16.mxu0 %v3737_v4  ;;  %v4306_v49 = vcombine.high %v315_v15, %v315_v15  ;;  %v2726_v21 = vunpack.i.l.bf16 %v4254_v57  ;;  %v2722_v8 = vunpack.i.h.bf16 %v2720_v27  ;;  %v2721_v23 = vunpack.i.l.bf16 %v2720_v27 }
 0x1d5   : > { %v966_v58 = vpack.c.bf16 %v948_v19, %v947_v47  ;;  %v967_v54 = vpack.c.bf16 %v946_v7, %v945_v1  ;;  %v2737_v33 = vunpack.i.h.bf16 %v4282_v28  ;;  %v2736_v4 = vunpack.i.l.bf16 %v4282_v28  ;;  %1494 = vmatprep.subr.bf16.mxu1 %v863_v11  ;;  %v2730_v14 = vpop.permute.xlu1 %2729 }
 0x1d6   : > { %v4994_v44 = vrot.slane %v3941_v60, %v3443_v51  ;;  %v1045_v20 = vsel %vm1041_vm6, %v2722_v8, %v2727_v9  ;;  %v4995_v57 = vunpack.i.h.bf16 %v3835_v38  ;;  %v1044_v10 = vsel %vm1041_vm6, %v2721_v23, %v2726_v21  ;;  %1495 = vmatpush1.bf16.msra.mxu1 %v862_v24 }
 0x1d7   : > { %1454 = vmatpush1.bf16.msra.mxu0 %v3756_v48  ;;  %v4996_v6 = vrot.slane %v3986_v59, %v3443_v51  ;;  %v4997_v42 = vunpack.i.l.bf16 %v3835_v38  ;;  %v2747_v63 = vunpack.i.h.bf16 %v2745_v37  ;;  %v2746_v55 = vunpack.i.l.bf16 %v2745_v37  ;;  %1496 = vmatprep.subr.bf16.mxu1 %v3761_v12 }
 0x1d8   : > { %v1005_v31 = vmul.bf16 %v4994_v44, %v965_v40  ;;  %v1047_v15 = vsel %vm1041_vm6, %v4995_v57, %v2722_v8  ;;  %v4998_v29 = vrot.slane %v3939_v52, %v3443_v51  ;;  %v2732_v48 = vunpack.i.h.bf16 %v2730_v14 }
 0x1d9   : > { %v1008_v30 = vmul.bf16 %v4996_v6, %v968_v2  ;;  %v1046_v40 = vsel %vm1041_vm6, %v4997_v42, %v2721_v23  ;;  %v2731_v19 = vunpack.i.l.bf16 %v2730_v14  ;;  %v1063_v1 = vpack.c.bf16 %v1045_v20, %v1044_v10  ;;  %v2740_v57 = vpop.permute.xlu1 %2739 }
 0x1da   : > { %v1006_v28 = vmul.bf16 %v4998_v29, %v966_v58  ;;  %v1062_v7 = vpack.c.bf16 %v1047_v15, %v1046_v40  ;;  %v4999_v2 = vunpack.i.l.bf16 %v3951_v61  ;;  %v5000_v47 = vunpack.i.h.bf16 %v3951_v61  ;;  %1497 = vmatpush1.bf16.msra.mxu1 %v3769_v18  ;;  %v2755_v29 = vpop.permute.xlu0 %2754 }
 0x1db   : > { %v5001_v11 = vunpack.i.l.bf16 %v3908_v46  ;;  %v5002_v12 = vunpack.i.h.bf16 %v3908_v46  ;;  %v1043_v23 = vsel %vm1041_vm6, %v2727_v9, %v2732_v48  ;;  %v1042_v61 = vsel %vm1041_vm6, %v2726_v21, %v2731_v19  ;;  %1498 = vmatprep.subr.bf16.mxu1 %v1008_v30 }
 0x1dc   : > { %v1143_v38 = vsel %vm1138_vm7, %v4999_v2, %v2736_v4  ;;  %v1144_v27 = vsel %vm1138_vm7, %v5000_v47, %v2737_v33  ;;  %1455 = vmatprep.subr.bf16.mxu0 %v1006_v28  ;;  %v5003_v58 = vunpack.i.l.bf16 %v3896_v34  ;;  %v5004_v44 = vunpack.i.h.bf16 %v3896_v34 }
 0x1dd   : > { %v1153_v24 = vsel %vm1138_vm7, %v2746_v55, %v5001_v11  ;;  %v1154_v8 = vsel %vm1138_vm7, %v2747_v63, %v5002_v12  ;;  %1456 = vmatpush1.bf16.msra.mxu0 %v1005_v31  ;;  %v1064_v20 = vpack.c.bf16 %v1043_v23, %v1042_v61  ;;  %v5005_v9 = vrot.slane %v3563_v39, %v3709_v22  ;;  %v2750_v51 = vpop.permute.xlu1 %2749 }
 0x1de   : > { %v1056_v37 = vsel %vm1041_vm6, %v2731_v19, %v5003_v58  ;;  %v1057_v46 = vsel %vm1041_vm6, %v2732_v48, %v5004_v44  ;;  %v1321_v21 = vrot.slane %v1316_v41, %v3440_v50  ;;  %v1314_v10 = vrot.slane %v1309_v32, %v3440_v50 }
 0x1df   : > { %v1103_v15 = vmul.bf16 %v5005_v9, %v1063_v1  ;;  %v2742_v6 = vunpack.i.h.bf16 %v2740_v57  ;;  %v2741_v42 = vunpack.i.l.bf16 %v2740_v57  ;;  %v5006_v34 = vrot.slane %v4962_v13, %v3709_v22 }
 0x1e0   : > { %v1065_v31 = vpack.c.bf16 %v1057_v46, %v1056_v37  ;;  %v1159_v14 = vpack.c.bf16 %v1144_v27, %v1143_v38  ;;  %v1007_v39 = vmul.bf16 %v996_v0, %v967_v54  ;;  %v1162_v18 = vpack.c.bf16 %v1154_v8, %v1153_v24 }
 0x1e1   : > { %v1102_v40 = vmul.bf16 %v5006_v34, %v1062_v7  ;;  %1457 = vmatprep.subr.bf16.mxu0 %v1103_v15  ;;  %v1323_v41 = vpack.i.b16 %v4288_v56, %v4288_v56  ;;  %v1140_v32 = vsel %vm1138_vm7, %v2742_v6, %v2747_v63  ;;  %v1142_v30 = vsel %vm1138_vm7, %v2737_v33, %v2742_v6  ;;  %v2760_v11 = vpop.permute.xlu1 %2759 }
 0x1e2   : > { %v1139_v13 = vsel %vm1138_vm7, %v2741_v42, %v2746_v55  ;;  %v1141_v28 = vsel %vm1138_vm7, %v2736_v4, %v2741_v42  ;;  %1499 = vmatpush1.bf16.msra.mxu1 %v1007_v39  ;;  %v5007_v0 = vrot.slane %v3511_v62, %v3709_v22  ;;  %v1104_v54 = vmul.bf16 %v1093_v45, %v1064_v20 }
 0x1e3   : > { %1458 = vmatpush1.bf16.msra.mxu0 %v1102_v40  ;;  %v1161_v7 = vpack.c.bf16 %v1140_v32, %v1139_v13  ;;  %v1160_v63 = vpack.c.bf16 %v1142_v30, %v1141_v28  ;;  %v2757_v33 = vunpack.i.h.bf16 %v2755_v29  ;;  %v2756_v48 = vunpack.i.l.bf16 %v2755_v29 }
 0x1e4   : > { %v1105_v56 = vmul.bf16 %v5007_v0, %v1065_v31  ;;  %v2752_v19 = vunpack.i.h.bf16 %v2750_v51  ;;  %v2751_v55 = vunpack.i.l.bf16 %v2750_v51  ;;  %v5008_v4 = vrot.slane %v3986_v59, %v3709_v22 }
 0x1e5   : > { %v5009_v2 = vrot.slane %v3939_v52, %v3709_v22  ;;  %v1199_v62 = vmul.bf16 %v1182_v5, %v1159_v14  ;;  %v1330_v26 = vpack.i.b16 %v4306_v49, %v4306_v49  ;;  %v5010_v47 = vunpack.i.h.bf16 %v3964_v36 }
 0x1e6   : > { %1500 = vmatprep.subr.bf16.mxu1 %v1105_v56  ;;  %v1202_v1 = vmul.bf16 %v5008_v4, %v1162_v18  ;;  %v1239_v45 = vsel %vm1235_vm8, %v2752_v19, %v2757_v33  ;;  %v1238_v27 = vsel %vm1235_vm8, %v2751_v55, %v2756_v48  ;;  %v5011_v52 = vunpack.i.l.bf16 %v3964_v36  ;;  %v2806_v4 = vld [vmem:[%s3155_s15 + $0x18] sm:$0xff] }
 0x1e7   : > { %v1200_v38 = vmul.bf16 %v5009_v2, %v1160_v63  ;;  %v1241_v59 = vsel %vm1235_vm8, %v5010_v47, %v2752_v19  ;;  %1501 = vmatpush1.bf16.msra.mxu1 %v1104_v54  ;;  %v1201_v49 = vmul.bf16 %v1190_v3, %v1161_v7  ;;  %v1257_v24 = vpack.c.bf16 %v1239_v45, %v1238_v27  ;;  %v2805_v19 = vld [vmem:[%s3155_s15 + $0x10] sm:$0xff] }
 0x1e8   : > { %v1240_v60 = vsel %vm1235_vm8, %v5011_v52, %v2751_v55  ;;  %1502 = vmatprep.subr.bf16.mxu1 %v1202_v1  ;;  %v2762_v12 = vunpack.i.h.bf16 %v2760_v11  ;;  %v2761_v8 = vunpack.i.l.bf16 %v2760_v11  ;;  %v1335_v36 = vrot.slane %v1330_v26, %v3440_v50  ;;  %v2807_v27 = vld [vmem:[%s3155_s15 + $0x50] sm:$0xff]  ;;  %v2808_v11 = vld [vmem:[%s3155_s15] sm:$0xff] }
 0x1e9   : > { %v1256_v5 = vpack.c.bf16 %v1241_v59, %v1240_v60  ;;  %1459 = vmatprep.subr.bf16.mxu0 %v1200_v38  ;;  %v1341_v23 = vmul.bf16 %v1321_v21, %v1257_v24  ;;  %v1328_v58 = vrot.slane %v1323_v41, %v3440_v50  ;;  %v5012_v22 = vunpack.i.l.bf16 %v4043_v53 }
 0x1ea   : > { %1460 = vmatpush1.bf16.msra.mxu0 %v1199_v62  ;;  %v1237_v37 = vsel %vm1235_vm8, %v2757_v33, %v2762_v12  ;;  %v1236_v44 = vsel %vm1235_vm8, %v2756_v48, %v2761_v8  ;;  %v5013_v3 = vunpack.i.h.bf16 %v4043_v53  ;;  %v306_v53 = vld [vmem:[%s4865_s5] sm:$0xff]  ;;  %v5014_v15 = vmov 1  }
 0x1eb   : > { %v1340_v61 = vmul.bf16 %v1314_v10, %v1256_v5  ;;  %v1250_v16 = vsel %vm1235_vm8, %v2761_v8, %v5012_v22  ;;  %v1258_v20 = vpack.c.bf16 %v1237_v37, %v1236_v44  ;;  %1503 = vmatpush1.bf16.msra.mxu1 %v1201_v49  ;;  %1461 = vmatprep.subr.bf16.mxu0 %v1341_v23  ;;  %v5015_v21 = vmov 2   ;;  %v4458_v40 = vpop.permute.xlu0 %1532  ;;  %v2809_v8 = vld [vmem:[%s3155_s15 + $0x58] sm:$0xff]  ;;  %v2811_v44 = vld [vmem:[%s3155_s15 + $0x40] sm:$0xff] }
 0x1ec   : > { %v1251_v46 = vsel %vm1235_vm8, %v2762_v12, %v5013_v3  ;;  %1979 = vperm.xlu0 %2773, %v306_v53   ;;  %2775 = vset.pattern.permute.xlu1 %v5014_v15 }
 0x1ed   : > { %v1259_v50 = vpack.c.bf16 %v1251_v46, %v1250_v16  ;;  %v1342_v9 = vmul.bf16 %v1328_v58, %v1258_v20  ;;  %2004 = vperm.xlu1 %2775, %v306_v53   ;;  %v2812_v20 = vld [vmem:[%s3155_s15 + $0x48] sm:$0xff] }
 0x1ee   : > { %1462 = vmatpush1.bf16.msra.mxu0 %v1340_v61  ;;  %v4447_v10 = vpop.permute.xlu1 %1536  ;;  %v2810_v61 = vld [vmem:[%s3155_s15 + $0x8] sm:$0xff] }
 0x1ef   : > { %v1343_v57 = vmul.bf16 %v1335_v36, %v1259_v50 }
 0x1f0   : > { %2776 = vset.pattern.permute.xlu0 %v5014_v15 }
 0x1f1   : > { %1478 = vmatmul.mubr.bf16.vlgmr.msra.gmra.mrb[4].mxu0 %v4076_v25  ;;  %1504 = vmatprep.subr.bf16.mxu1 %v1343_v57  ;;  %v4462_v29 = vpop.permute.xlu0 %1560 }
 0x1f2   : > { %1505 = vmatpush1.bf16.msra.mxu1 %v1342_v9  ;;  %1837 = vmatprep.mubr.bf16.mxu0 %v4953_v17 }
 0x1f3   : > { %2008 = vperm.xlu0 %2776, %v307_v43   ;;  %2777 = vset.pattern.permute.xlu1 %v5015_v21  ;;  %v4451_v6 = vpop.permute.xlu1 %1556 }
 0x1f4   : > { %2044 = vperm.xlu1 %2777, %v306_v53  }
 0x1f5   : > { %1521 = vmatmul.mubr.bf16.vlgmr.msra.gmra.mrb[4].mxu1 %v4076_v25  ;;  %v5016_v25 = vmov 3  }
 0x1f6   : > { %1880 = vmatprep.mubr.bf16.mxu1 %v4953_v17  ;;  %v4479_v26 = vpop.permute.xlu0 %1636 }
 0x1f7   : > { %2778 = vset.pattern.permute.xlu0 %v5016_v25 }
 0x1f8   : > { %2084 = vperm.xlu0 %2778, %v306_v53   ;;  %2048 = vperm.xlu1 %2777, %v307_v43  }
 0x1f9   : > { %v4454_v42 = vpop.permute.xlu1 %1596 }
 0x1fc   : > { %2781 = vset.pattern.permute.xlu0 %v4957_v35  ;;  %2779 = vset.pattern.permute.xlu1 %v5016_v25 }
 0x1fd   : > { %2128 = vperm.xlu0 %2781, %v307_v43   ;;  %2088 = vperm.xlu1 %2779, %v307_v43   ;;  %v4456_v34 = vpop.permute.xlu1 %1600  ;;  %v4504_v43 = vpop.permute.xlu0 %1680 }
 0x201   : > { %2780 = vset.pattern.permute.xlu1 %v4957_v35 }
 0x202   : > { %2124 = vperm.xlu1 %2780, %v306_v53  }
 0x204   : > { %v4460_v31 = vpop.permute.xlu1 %1640 }
 0x209   : > { %v4466_v32 = vpop.permute.xlu1 %1676 }
 0x20f   : > { %v4489_v12 = vpop.permute.xlu1 %1700 }
 0x28a   : > { %v1436_v14 = vpop.f32.mrb[0].mxu1 }
 0x28b   : > { %v1541_v39 = vmul.f32 %v4458_v40, %v1436_v14  ;;  %v1438_v18 = vpop.f32.mrb[1].mxu1 }
 0x28c   : > { %v1542_v41 = vmul.f32 %v4458_v40, %v1438_v18  ;;  %v1440_v35 = vpop.f32.mrb[2].mxu1 }
 0x28d   : > { %v1565_v30 = vadd.f32 %v4451_v6, %v1541_v39  ;;  %v1549_v13 = vmul.f32 %v4447_v10, %v1440_v35  ;;  %v1442_v7 = vpop.f32.mrb[3].mxu1  ;;  %v4511_v39 = vpop.permute.xlu1 %1704 }
 0x28e   : > { %v1393_v28 = vpop.f32.mrb[0].mxu0  ;;  %v1566_v51 = vadd.f32 %v4451_v6, %v1542_v41  ;;  %v1550_v56 = vmul.f32 %v4447_v10, %v1442_v7 }
 0x28f   : > { %v1539_v0 = vmul.f32 %v4458_v40, %v1393_v28  ;;  %v1395_v54 = vpop.f32.mrb[1].mxu0  ;;  %v1573_v33 = vadd.f32 %v4462_v29, %v1549_v13  ;;  %v1581_v55 = vadd.f32 %v2805_v19, %v1565_v30 }
 0x290   : > { %v1540_v63 = vmul.f32 %v4458_v40, %v1395_v54  ;;  %v1397_v48 = vpop.f32.mrb[2].mxu0  ;;  %v1582_v1 = vadd.f32 %v2806_v4, %v1566_v51  ;;  %v1574_v45 = vadd.f32 %v4462_v29, %v1550_v56 }
 0x291   : > { %v1563_v2 = vadd.f32 %v4451_v6, %v1539_v0  ;;  %v1547_v38 = vmul.f32 %v4447_v10, %v1397_v48  ;;  %v1399_v62 = vpop.f32.mrb[3].mxu0  ;;  %v1589_v52 = vadd.f32 %v2807_v27, %v1573_v33  ;;  %v1605_v60 = vadd.f32 %v4454_v42, %v1581_v55 }
 0x292   : > { %v1564_v47 = vadd.f32 %v4451_v6, %v1540_v63  ;;  %v1548_v59 = vmul.f32 %v4447_v10, %v1399_v62  ;;  %v1606_v5 = vadd.f32 %v4454_v42, %v1582_v1  ;;  %v1590_v23 = vadd.f32 %v2809_v8, %v1574_v45 }
 0x293   : > { %v1579_v49 = vadd.f32 %v2808_v11, %v1563_v2  ;;  %v1571_v24 = vadd.f32 %v4462_v29, %v1547_v38  ;;  %v1613_v37 = vadd.f32 %v4456_v34, %v1589_v52  ;;  %vm1621_vm10 = vcmp.gt.f32.partialorder %v1605_v60, 0.0 }
 0x294   : > { %v1580_v36 = vadd.f32 %v2810_v61, %v1564_v47  ;;  %v1572_v58 = vadd.f32 %v4462_v29, %v1548_v59  ;;  %vm1622_vm9 = vcmp.gt.f32.partialorder %v1606_v5, 0.0  ;;  %v1614_v16 = vadd.f32 %v4456_v34, %v1590_v23 }
 0x295   : > { %v1587_v22 = vadd.f32 %v2811_v44, %v1571_v24  ;;  %v4498_v3 = vadd.f32 %v4454_v42, %v1579_v49  ;;  %v1646_v57 = vmul.f32 %v4479_v26, %v1606_v5  ;;  %vm1629_vm12 = vcmp.gt.f32.partialorder %v1613_v37, 0.0  ;;  %v4568_v44 = vld [vmem:[%s4862_s2] sm:$0xff]  }
 0x296   : > { %v1604_v46 = vadd.f32 %v4454_v42, %v1580_v36  ;;  %v1588_v50 = vadd.f32 %v2812_v20, %v1572_v58  ;;  %vm1630_vm11 = vcmp.gt.f32.partialorder %v1614_v16, 0.0  ;;  %v1654_v53 = vmul.f32 %v4460_v31, %v1614_v16 }
 0x297   : > { %v1611_v9 = vadd.f32 %v4456_v34, %v1587_v22  ;;  %v1662_v21 = vsel %vm1622_vm9, %v1606_v5, %v1646_v57  ;;  %v1645_v25 = vmul.f32 %v4479_v26, %v1605_v60  ;;  %vm1619_vm15 = vcmp.gt.f32.partialorder %v4498_v3, 0.0 }
 0x298   : > { %vm1620_vm13 = vcmp.gt.f32.partialorder %v1604_v46, 0.0  ;;  %v1612_v15 = vadd.f32 %v4456_v34, %v1588_v50  ;;  %v1670_v18 = vsel %vm1630_vm11, %v1614_v16, %v1654_v53  ;;  %v4514_v41 = vadd.f32 %v4466_v32, %v1662_v21 }
 0x299   : > { %vm1627_vm14 = vcmp.gt.f32.partialorder %v1611_v9, 0.0  ;;  %v1651_v14 = vmul.f32 %v4460_v31, %v1611_v9  ;;  %v4519_v30 = vadd.f32 %v4504_v43, %v1670_v18  ;;  %v1653_v13 = vmul.f32 %v4460_v31, %v1613_v37 }
 0x29a   : > { %vm1628_vm2 = vcmp.gt.f32.partialorder %v1612_v15, 0.0  ;;  %v1652_v35 = vmul.f32 %v4460_v31, %v1612_v15  ;;  %v1710_v7 = vadd.f32 %v4489_v12, %v4514_v41  ;;  %v1661_v51 = vsel %vm1621_vm10, %v1605_v60, %v1645_v25 }
 0x29b   : > { %v1667_v28 = vsel %vm1627_vm14, %v1611_v9, %v1651_v14  ;;  %v1644_v0 = vmul.f32 %v4479_v26, %v1604_v46  ;;  %v1718_v56 = vadd.f32 %v4511_v39, %v4519_v30  ;;  %v1669_v54 = vsel %vm1629_vm12, %v1613_v37, %v1653_v13 }
 0x29c   : > { %v4530_v63 = vadd.f32 %v4466_v32, %v1661_v51  ;;  %v1668_v33 = vsel %vm1628_vm2, %v1612_v15, %v1652_v35  ;;  %vm1726_vm1 = vcmp.gt.f32.partialorder %v1710_v7, 0.0  ;;  %vm1742_vm3 = vcmp.lt.f32.partialorder %v1710_v7, 0.0 }
 0x29d   : > { %v4533_v48 = vadd.f32 %v4504_v43, %v1669_v54  ;;  %v1660_v19 = vsel %vm1620_vm13, %v1604_v46, %v1644_v0  ;;  %vm1734_vm4 = vcmp.gt.f32.partialorder %v1718_v56, 0.0  ;;  %vm1750_vm5 = vcmp.lt.f32.partialorder %v1718_v56, 0.0 }
 0x29e   : > { %v5017_v55 = vmov 0.0   ;;  %v1709_v1 = vadd.f32 %v4489_v12, %v4530_v63  ;;  %v4543_v45 = vadd.f32 %v4466_v32, %v1660_v19  ;;  %v4546_v59 = vadd.f32 %v4504_v43, %v1668_v33 }
 0x29f   : > { %v1758_v4 = vsel %vm1742_vm3, -1.0, %v5017_v55  ;;  %v1766_v2 = vsel %vm1750_vm5, -1.0, %v5017_v55  ;;  %v1717_v62 = vadd.f32 %v4511_v39, %v4533_v48  ;;  %v1643_v8 = vmul.f32 %v4479_v26, %v4498_v3 }
 0x2a0   : > { %v1774_v38 = vsel %vm1726_vm1, 1.0, %v1758_v4  ;;  %v1782_v47 = vsel %vm1734_vm4, 1.0, %v1766_v2  ;;  %vm1725_vm6 = vcmp.gt.f32.partialorder %v1709_v1, 0.0  ;;  %vm1741_vm7 = vcmp.lt.f32.partialorder %v1709_v1, 0.0  ;;  %v2814_v2 = vld [vmem:[%s3155_s15 + $0x28] sm:$0xff] }
 0x2a1   : > { %v1790_v27 = vpack.c.bf16 %v1782_v47, %v1774_v38  ;;  %vm1733_vm8 = vcmp.gt.f32.partialorder %v1717_v62, 0.0  ;;  %vm1749_vm9 = vcmp.lt.f32.partialorder %v1717_v62, 0.0  ;;  %v1757_v52 = vsel %vm1741_vm7, -1.0, %v5017_v55 }
 0x2a2   : > { %v1765_v60 = vsel %vm1749_vm9, -1.0, %v5017_v55  ;;  %v1773_v5 = vsel %vm1725_vm6, 1.0, %v1757_v52  ;;  %v1708_v11 = vadd.f32 %v4489_v12, %v4543_v45  ;;  %v1716_v49 = vadd.f32 %v4511_v39, %v4546_v59 }
 0x2a3   : > { %1848 = vmatprep.subr.bf16.mxu1 %v1790_v27  ;;  %v1781_v24 = vsel %vm1733_vm8, 1.0, %v1765_v60  ;;  %v4557_v23 = vadd.f32 %v4504_v43, %v1667_v28  ;;  %v1659_v58 = vsel %vm1619_vm15, %v4498_v3, %v1643_v8  ;;  %v2815_v60 = vld [vmem:[%s3155_s15 + $0x60] sm:$0xff] }
 0x2a4   : > { %v1789_v61 = vpack.c.bf16 %v1781_v24, %v1773_v5  ;;  %vm1724_vm10 = vcmp.gt.f32.partialorder %v1708_v11, 0.0  ;;  %vm1732_vm11 = vcmp.gt.f32.partialorder %v1716_v49, 0.0  ;;  %vm1740_vm12 = vcmp.lt.f32.partialorder %v1708_v11, 0.0 }
 0x2a5   : > { %vm1748_vm13 = vcmp.lt.f32.partialorder %v1716_v49, 0.0  ;;  %v1756_v36 = vsel %vm1740_vm12, -1.0, %v5017_v55  ;;  %v1715_v37 = vadd.f32 %v4511_v39, %v4557_v23  ;;  %v4572_v46 = vadd.f32 %v4466_v32, %v1659_v58 }
 0x2a6   : > { %1849 = vmatpush1.bf16.msra.mxu1 %v1789_v61  ;;  %v1764_v22 = vsel %vm1748_vm13, -1.0, %v5017_v55  ;;  %v1772_v16 = vsel %vm1724_vm10, 1.0, %v1756_v36  ;;  %v2816_v61 = vld [vmem:[%s3155_s15 + $0x68] sm:$0xff] }
 0x2a7   : > { %v1780_v20 = vsel %vm1732_vm11, 1.0, %v1764_v22  ;;  %vm1731_vm14 = vcmp.gt.f32.partialorder %v1715_v37, 0.0  ;;  %vm1747_vm2 = vcmp.lt.f32.partialorder %v1715_v37, 0.0  ;;  %v1707_v3 = vadd.f32 %v4489_v12, %v4572_v46 }
 0x2a8   : > { %v1788_v50 = vpack.c.bf16 %v1780_v20, %v1772_v16  ;;  %v1763_v57 = vsel %vm1747_vm2, -1.0, %v5017_v55  ;;  %v2817_v16 = vld [vmem:[%s3155_s15 + $0x30] sm:$0xff] }
 0x2a9   : > { %2335 = vmatmul.mubr.msk.bf16.vlgmr.msra.gmra.mrb[8].mxu1 %vm1355_vm0, %v4568_v44  ;;  %vm1723_vm15 = vcmp.gt.f32.partialorder %v1707_v3, 0.0  ;;  %vm1739_vm1 = vcmp.lt.f32.partialorder %v1707_v3, 0.0  ;;  %v1779_v9 = vsel %vm1731_vm14, 1.0, %v1763_v57  ;;  %v2818_v57 = vld [vmem:[%s3155_s15 + $0x38] sm:$0xff] }
 0x2aa   : > { %1805 = vmatprep.subr.bf16.mxu0 %v1788_v50  ;;  %1966 = vmatprep.mubr.bf16.mxu1 %v4953_v17  ;;  %v1755_v53 = vsel %vm1739_vm1, -1.0, %v5017_v55 }
 0x2ab   : > { %v1771_v15 = vsel %vm1723_vm15, 1.0, %v1755_v53 }
 0x2ac   : > { %v1787_v21 = vpack.c.bf16 %v1779_v9, %v1771_v15 }
 0x2ae   : > { %1806 = vmatpush1.bf16.msra.mxu0 %v1787_v21 }
 0x2b1   : > { %2334 = vmatmul.mubr.msk.bf16.vlgmr.msra.gmra.mrb[8].mxu0 %vm1355_vm0, %v4568_v44 }
 0x2b2   : > { %1923 = vmatprep.mubr.bf16.mxu0 %v4953_v17  ;;  %v2813_v17 = vld [vmem:[%s3155_s15 + $0x20] sm:$0xff] }
 0x2c4   : > { %v1479_v25 = vpop.f32.mrb[4].mxu0 }
 0x2c5   : > { %v1543_v14 = vmul.f32 %v4458_v40, %v1479_v25  ;;  %v1481_v18 = vpop.f32.mrb[5].mxu0 }
 0x2c6   : > { %v1544_v35 = vmul.f32 %v4458_v40, %v1481_v18  ;;  %v1483_v13 = vpop.f32.mrb[6].mxu0 }
 0x2c7   : > { %v1567_v28 = vadd.f32 %v4451_v6, %v1543_v14  ;;  %v1551_v7 = vmul.f32 %v4447_v10, %v1483_v13  ;;  %v1485_v51 = vpop.f32.mrb[7].mxu0 }
 0x2c8   : > { %v1568_v0 = vadd.f32 %v4451_v6, %v1544_v35  ;;  %v1552_v56 = vmul.f32 %v4447_v10, %v1485_v51  ;;  %v1522_v54 = vpop.f32.mrb[4].mxu1 }
 0x2c9   : > { %v1583_v33 = vadd.f32 %v2813_v17, %v1567_v28  ;;  %v1575_v19 = vadd.f32 %v4462_v29, %v1551_v7  ;;  %v1545_v4 = vmul.f32 %v4458_v40, %v1522_v54  ;;  %v1524_v1 = vpop.f32.mrb[5].mxu1 }
 0x2ca   : > { %v1584_v38 = vadd.f32 %v2814_v2, %v1568_v0  ;;  %v1576_v62 = vadd.f32 %v4462_v29, %v1552_v56  ;;  %v1546_v47 = vmul.f32 %v4458_v40, %v1524_v1  ;;  %v1526_v27 = vpop.f32.mrb[6].mxu1  ;;  %v2819_v0 = vld [vmem:[%s3155_s15 + $0x70] sm:$0xff] }
 0x2cb   : > { %v1607_v52 = vadd.f32 %v4454_v42, %v1583_v33  ;;  %v1591_v5 = vadd.f32 %v2815_v60, %v1575_v19  ;;  %v1569_v11 = vadd.f32 %v4451_v6, %v1545_v4  ;;  %v1553_v49 = vmul.f32 %v4447_v10, %v1526_v27  ;;  %v1528_v24 = vpop.f32.mrb[7].mxu1  ;;  %v2820_v33 = vld [vmem:[%s3155_s15 + $0x78] sm:$0xff]  ;;  %s2310_s15 = sshll.u32 %s3151_s18, 6 }
 0x2cc   : > { %v1608_v8 = vadd.f32 %v4454_v42, %v1584_v38  ;;  %v1592_v36 = vadd.f32 %v2816_v61, %v1576_v62  ;;  %v1570_v58 = vadd.f32 %v4451_v6, %v1546_v47  ;;  %v1554_v40 = vmul.f32 %v4447_v10, %v1528_v24  ;;  %s4741_s30 = scalar_lea.vmem [#allocation7], %s2310_s15 }
 0x2cd   : > { %vm1623_vm3 = vcmp.gt.f32.partialorder %v1607_v52, 0.0  ;;  %v1647_v37 = vmul.f32 %v4479_v26, %v1607_v52  ;;  %v1615_v22 = vadd.f32 %v4456_v34, %v1591_v5  ;;  %v1585_v20 = vadd.f32 %v2817_v16, %v1569_v11  ;;  %s2217_s8 = sshll.u32 %s4741_s30, 4  ;;  %s4815_s8 = int_to_ptr.vmem [resolvable:$true] %s2217_s8 }
 0x2ce   : > { %vm1624_vm4 = vcmp.gt.f32.partialorder %v1608_v8, 0.0  ;;  %v1648_v50 = vmul.f32 %v4479_v26, %v1608_v8  ;;  %v1616_v3 = vadd.f32 %v4456_v34, %v1592_v36  ;;  %v1586_v9 = vadd.f32 %v2818_v57, %v1570_v58  ;;  %s2879_s20 = scalar_lea.vmem %s4815_s8, 1024  ;;  %p2886_p4 = scmp.lt.s32.totalorder %s4815_s8, %s2884_s13 }
 0x2cf   : > { %v1663_v53 = vsel %vm1623_vm3, %v1607_v52, %v1647_v37  ;;  %vm1631_vm5 = vcmp.gt.f32.partialorder %v1615_v22, 0.0  ;;  %v1655_v6 = vmul.f32 %v4460_v31, %v1615_v22  ;;  %v1609_v10 = vadd.f32 %v4454_v42, %v1585_v20  ;;  %p2880_p8 = scmp.ne.s32.totalorder %s4815_s8, %s2879_s20  ;;  %p2887_p7 = scmp.lt.s32.totalorder %s2885_s12, %s2879_s20 }
 0x2d0   : > { %v4613_v15 = vadd.f32 %v4466_v32, %v1663_v53  ;;  %vm1632_vm6 = vcmp.gt.f32.partialorder %v1616_v3, 0.0  ;;  %v1656_v21 = vmul.f32 %v4460_v31, %v1616_v3  ;;  %v1610_v25 = vadd.f32 %v4454_v42, %v1586_v9 }
 0x2d1   : > { %v1671_v14 = vsel %vm1631_vm5, %v1615_v22, %v1655_v6  ;;  %vm1625_vm7 = vcmp.gt.f32.partialorder %v1609_v10, 0.0  ;;  %v1649_v18 = vmul.f32 %v4479_v26, %v1609_v10  ;;  %v1577_v35 = vadd.f32 %v4462_v29, %v1553_v49  ;;  %p2881_p10 = pnand %p2880_p8, %p5018_p9  ;;  %p2888_p5 = por %p2887_p7, %p2886_p4 }
 0x2d2   : > { %v4620_v13 = vadd.f32 %v4504_v43, %v1671_v14  ;;  %vm1626_vm8 = vcmp.gt.f32.partialorder %v1610_v25, 0.0  ;;  %v1650_v28 = vmul.f32 %v4479_v26, %v1610_v25  ;;  %v1578_v7 = vadd.f32 %v4462_v29, %v1554_v40 }
 0x2d3   : > { %v1665_v51 = vsel %vm1625_vm7, %v1609_v10, %v1649_v18  ;;  %v1593_v56 = vadd.f32 %v2819_v0, %v1577_v35  ;;  %v1664_v54 = vsel %vm1624_vm4, %v1608_v8, %v1648_v50  ;;  %v1672_v42 = vsel %vm1632_vm6, %v1616_v3, %v1656_v21  ;;  %v4681_v18 = vpop.permute.xlu1 %1984  ;;  %p2882_p1 = pneg %p2881_p10 }
 0x2d4   : > { %v4627_v17 = vadd.f32 %v4466_v32, %v1665_v51  ;;  %v1594_v19 = vadd.f32 %v2820_v33, %v1578_v7  ;;  %v4631_v4 = vadd.f32 %v4466_v32, %v1664_v54  ;;  %v4634_v1 = vadd.f32 %v4504_v43, %v1672_v42  ;;  %v4687_v7 = vpop.permute.xlu0 %1979 }
 0x2d5   : > { %v1617_v26 = vadd.f32 %v4456_v34, %v1593_v56  ;;  %v1711_v29 = vadd.f32 %v4489_v12, %v4613_v15  ;;  %v1719_v2 = vadd.f32 %v4511_v39, %v4620_v13  ;;  %v1666_v38 = vsel %vm1626_vm8, %v1610_v25, %v1650_v28  ;;  %p2889_p11 = pnand %p2888_p5, %p2882_p1 }
 0x2d6   : > { %v1618_v62 = vadd.f32 %v4456_v34, %v1594_v19  ;;  %v1712_v47 = vadd.f32 %v4489_v12, %v4631_v4  ;;  %v1720_v27 = vadd.f32 %v4511_v39, %v4634_v1  ;;  %v4648_v52 = vadd.f32 %v4466_v32, %v1666_v38 }
 0x2d7   : > { %vm1633_vm9 = vcmp.gt.f32.partialorder %v1617_v26, 0.0  ;;  %v1657_v60 = vmul.f32 %v4460_v31, %v1617_v26  ;;  %vm1727_vm10 = vcmp.gt.f32.partialorder %v1711_v29, 0.0  ;;  %vm1735_vm11 = vcmp.gt.f32.partialorder %v1719_v2, 0.0  ;;  %v4683_v35 = vpop.permute.xlu1 %2004 }
 0x2d8   : > { %vm1634_vm12 = vcmp.gt.f32.partialorder %v1618_v62, 0.0  ;;  %v1658_v5 = vmul.f32 %v4460_v31, %v1618_v62  ;;  %vm1728_vm13 = vcmp.gt.f32.partialorder %v1712_v47, 0.0  ;;  %vm1736_vm14 = vcmp.gt.f32.partialorder %v1720_v27, 0.0  ;;  %v4691_v0 = vpop.permute.xlu0 %2008 }
 0x2d9   : > { %v1673_v34 = vsel %vm1633_vm9, %v1617_v26, %v1657_v60  ;;  %vm1744_vm2 = vcmp.lt.f32.partialorder %v1712_v47, 0.0  ;;  %vm1752_vm15 = vcmp.lt.f32.partialorder %v1720_v27, 0.0  ;;  %vm1743_vm1 = vcmp.lt.f32.partialorder %v1711_v29, 0.0 }
 0x2da   : > { %v4653_v11 = vadd.f32 %v4504_v43, %v1673_v34  ;;  %v1760_v32 = vsel %vm1744_vm2, -1.0, %v5017_v55  ;;  %v1768_v49 = vsel %vm1752_vm15, -1.0, %v5017_v55  ;;  %vm1751_vm3 = vcmp.lt.f32.partialorder %v1719_v2, 0.0 }
 0x2db   : > { %v1776_v24 = vsel %vm1728_vm13, 1.0, %v1760_v32  ;;  %v1784_v8 = vsel %vm1736_vm14, 1.0, %v1768_v49  ;;  %v1759_v61 = vsel %vm1743_vm1, -1.0, %v5017_v55  ;;  %v1767_v31 = vsel %vm1751_vm3, -1.0, %v5017_v55  ;;  %v4685_v28 = vpop.permute.xlu1 %2044 }
 0x2dc   : > { %v1792_v36 = vpack.c.bf16 %v1784_v8, %v1776_v24  ;;  %v1775_v58 = vsel %vm1727_vm10, 1.0, %v1759_v61  ;;  %v1783_v40 = vsel %vm1735_vm11, 1.0, %v1767_v31  ;;  %v1674_v37 = vsel %vm1634_vm12, %v1618_v62, %v1658_v5  ;;  %v4705_v5 = vpop.permute.xlu0 %2084 }
 0x2dd   : > { %v1791_v22 = vpack.c.bf16 %v1783_v40, %v1775_v58  ;;  %v4663_v16 = vadd.f32 %v4504_v43, %v1674_v37  ;;  %v1714_v20 = vadd.f32 %v4489_v12, %v4648_v52  ;;  %v1713_v50 = vadd.f32 %v4489_v12, %v4627_v17 }
 0x2de   : > { %1891 = vmatprep.subr.bf16.mxu0 %v1792_v36  ;;  %v1721_v3 = vadd.f32 %v4511_v39, %v4653_v11 }
 0x2df   : > { %1892 = vmatpush1.bf16.msra.mxu0 %v1791_v22  ;;  %v1722_v57 = vadd.f32 %v4511_v39, %v4663_v16  ;;  %vm1730_vm4 = vcmp.gt.f32.partialorder %v1714_v20, 0.0  ;;  %vm1746_vm5 = vcmp.lt.f32.partialorder %v1714_v20, 0.0  ;;  %vm1745_vm7 = vcmp.lt.f32.partialorder %v1713_v50, 0.0 }
 0x2e0   : > { %v1762_v9 = vsel %vm1746_vm5, -1.0, %v5017_v55  ;;  %vm1737_vm6 = vcmp.gt.f32.partialorder %v1721_v3, 0.0  ;;  %vm1753_vm8 = vcmp.lt.f32.partialorder %v1721_v3, 0.0  ;;  %vm1729_vm11 = vcmp.gt.f32.partialorder %v1713_v50, 0.0 }
 0x2e1   : > { %vm1738_vm9 = vcmp.gt.f32.partialorder %v1722_v57, 0.0  ;;  %vm1754_vm10 = vcmp.lt.f32.partialorder %v1722_v57, 0.0  ;;  %v1761_v12 = vsel %vm1745_vm7, -1.0, %v5017_v55  ;;  %v1769_v53 = vsel %vm1753_vm8, -1.0, %v5017_v55 }
 0x2e2   : > { %2336 = vmatmul.mubr.msk.bf16.vlgmr.msra.gmra.mrb[12].mxu0 %vm1355_vm0, %v4568_v44  ;;  %v1770_v43 = vsel %vm1754_vm10, -1.0, %v5017_v55  ;;  %v1778_v39 = vsel %vm1730_vm4, 1.0, %v1762_v9  ;;  %v1785_v10 = vsel %vm1737_vm6, 1.0, %v1769_v53  ;;  %v1777_v25 = vsel %vm1729_vm11, 1.0, %v1761_v12  ;;  %v4689_v55 = vpop.permute.xlu1 %2048 }
 0x2e3   : > { %v1786_v6 = vsel %vm1738_vm9, 1.0, %v1770_v43  ;;  %v1793_v14 = vpack.c.bf16 %v1785_v10, %v1777_v25 }
 0x2e4   : > { %v1794_v21 = vpack.c.bf16 %v1786_v6, %v1778_v39  ;;  %v4729_v6 = vpop.permute.xlu0 %2128 }
 0x2e6   : > { %1934 = vmatprep.subr.bf16.mxu1 %v1794_v21  ;;  %v4699_v38 = vpop.permute.xlu1 %2088 }
 0x2e7   : > { %1935 = vmatpush1.bf16.msra.mxu1 %v1793_v14 }
 0x2ea   : > { %2337 = vmatmul.mubr.msk.bf16.vlgmr.msra.gmra.mrb[12].mxu1 %vm1355_vm0, %v4568_v44 }
 0x37c   : > { %v1882_v51 = vpop.f32.mrb[8].mxu1 }
 0x37d   : > { %v1989_v56 = vmul.f32 %v4687_v7, %v1882_v51  ;;  %v1884_v54 = vpop.f32.mrb[9].mxu1 }
 0x37e   : > { %v1990_v42 = vmul.f32 %v4687_v7, %v1884_v54  ;;  %v1886_v33 = vpop.f32.mrb[10].mxu1 }
 0x37f   : > { %v2013_v44 = vadd.f32 %v4683_v35, %v1989_v56  ;;  %v1997_v19 = vmul.f32 %v4681_v18, %v1886_v33  ;;  %v1888_v26 = vpop.f32.mrb[11].mxu1 }
 0x380   : > { %v2014_v29 = vadd.f32 %v4683_v35, %v1990_v42  ;;  %v1998_v2 = vmul.f32 %v4681_v18, %v1888_v26 }
 0x381   : > { %v2029_v62 = vadd.f32 %v2013_v44, %v4530_v63  ;;  %v2021_v47 = vadd.f32 %v4691_v0, %v1997_v19 }
 0x382   : > { %v2030_v27 = vadd.f32 %v2014_v29, %v4514_v41  ;;  %v2022_v60 = vadd.f32 %v4691_v0, %v1998_v2 }
 0x383   : > { %v2053_v34 = vadd.f32 %v4685_v28, %v2029_v62  ;;  %v2037_v32 = vadd.f32 %v2021_v47, %v4533_v48  ;;  %v4716_v48 = vpop.permute.xlu1 %2124 }
 0x384   : > { %v2054_v49 = vadd.f32 %v4685_v28, %v2030_v27  ;;  %v2038_v24 = vadd.f32 %v2022_v60, %v4519_v30  ;;  %v1839_v8 = vpop.f32.mrb[8].mxu0 }
 0x385   : > { %vm2069_vm0 = vcmp.gt.f32.partialorder %v2053_v34, 0.0  ;;  %v2061_v63 = vadd.f32 %v4689_v55, %v2037_v32  ;;  %v2093_v61 = vmul.f32 %v4705_v5, %v2053_v34  ;;  %v1987_v41 = vmul.f32 %v4687_v7, %v1839_v8  ;;  %v1841_v36 = vpop.f32.mrb[9].mxu0 }
 0x386   : > { %vm2070_vm12 = vcmp.gt.f32.partialorder %v2054_v49, 0.0  ;;  %v2062_v31 = vadd.f32 %v4689_v55, %v2038_v24  ;;  %v2094_v58 = vmul.f32 %v4705_v5, %v2054_v49  ;;  %v1988_v40 = vmul.f32 %v4687_v7, %v1841_v36  ;;  %v1843_v37 = vpop.f32.mrb[10].mxu0 }
 0x387   : > { %v2101_v30 = vmul.f32 %v4699_v38, %v2061_v63  ;;  %v2109_v22 = vsel %vm2069_vm0, %v2053_v34, %v2093_v61  ;;  %vm2077_vm13 = vcmp.gt.f32.partialorder %v2061_v63, 0.0  ;;  %v2011_v20 = vadd.f32 %v4683_v35, %v1987_v41  ;;  %v1845_v3 = vpop.f32.mrb[11].mxu0 }
 0x388   : > { %v1995_v50 = vmul.f32 %v4681_v18, %v1843_v37  ;;  %v2102_v57 = vmul.f32 %v4699_v38, %v2062_v31  ;;  %v2110_v9 = vsel %vm2070_vm12, %v2054_v49, %v2094_v58  ;;  %v2012_v12 = vadd.f32 %v4683_v35, %v1988_v40 }
 0x389   : > { %v1996_v43 = vmul.f32 %v4681_v18, %v1845_v3  ;;  %v2133_v53 = vadd.f32 %v4716_v48, %v2109_v22  ;;  %v2134_v39 = vadd.f32 %v4716_v48, %v2110_v9  ;;  %v2027_v10 = vadd.f32 %v2011_v20, %v4572_v46 }
 0x38a   : > { %v2019_v21 = vadd.f32 %v4691_v0, %v1995_v50  ;;  %vm2078_vm14 = vcmp.gt.f32.partialorder %v2062_v31, 0.0  ;;  %v2117_v25 = vsel %vm2077_vm13, %v2061_v63, %v2101_v30  ;;  %v2028_v14 = vadd.f32 %v2012_v12, %v4543_v45 }
 0x38b   : > { %v2020_v51 = vadd.f32 %v4691_v0, %v1996_v43  ;;  %v2353_v56 = vpack.c.bf16 %v2134_v39, %v2133_v53  ;;  %v2118_v54 = vsel %vm2078_vm14, %v2062_v31, %v2102_v57  ;;  %v2051_v42 = vadd.f32 %v4685_v28, %v2027_v10 }
 0x38c   : > { %v2035_v33 = vadd.f32 %v2019_v21, %v4557_v23  ;;  %v2141_v44 = vadd.f32 %v4729_v6, %v2117_v25  ;;  %v2142_v19 = vadd.f32 %v4729_v6, %v2118_v54  ;;  %v2052_v46 = vadd.f32 %v4685_v28, %v2028_v14 }
 0x38d   : > { %v2036_v26 = vadd.f32 %v2020_v51, %v4546_v59  ;;  %2196 = vst [vmem:[%s4741_s30 + $0x8] sm:$0xff] %v2353_v56  ;;  %vm2067_vm2 = vcmp.gt.f32.partialorder %v2051_v42, 0.0  ;;  %v2091_v29 = vmul.f32 %v4705_v5, %v2051_v42 }
 0x38e   : > { %v2059_v45 = vadd.f32 %v4689_v55, %v2035_v33  ;;  %v2357_v2 = vpack.c.bf16 %v2142_v19, %v2141_v44  ;;  %vm2068_vm15 = vcmp.gt.f32.partialorder %v2052_v46, 0.0  ;;  %v2092_v62 = vmul.f32 %v4705_v5, %v2052_v46 }
 0x38f   : > { %v2060_v23 = vadd.f32 %v4689_v55, %v2036_v26  ;;  %v2107_v47 = vsel %vm2067_vm2, %v2051_v42, %v2091_v29 }
 0x390   : > { %vm2075_vm1 = vcmp.gt.f32.partialorder %v2059_v45, 0.0  ;;  %v2099_v59 = vmul.f32 %v4699_v38, %v2059_v45  ;;  %2200 = vst [vmem:[%s4741_s30 + $0x28] sm:$0xff] %v2357_v2  ;;  %v2108_v60 = vsel %vm2068_vm15, %v2052_v46, %v2092_v62  ;;  %v2131_v34 = vadd.f32 %v4716_v48, %v2107_v47 }
 0x391   : > { %vm2076_vm3 = vcmp.gt.f32.partialorder %v2060_v23, 0.0  ;;  %v2100_v27 = vmul.f32 %v4699_v38, %v2060_v23  ;;  %v2132_v32 = vadd.f32 %v4716_v48, %v2108_v60 }
 0x392   : > { %v2115_v49 = vsel %vm2075_vm1, %v2059_v45, %v2099_v59 }
 0x393   : > { %v2116_v24 = vsel %vm2076_vm3, %v2060_v23, %v2100_v27  ;;  %v2139_v8 = vadd.f32 %v4729_v6, %v2115_v49  ;;  %v2352_v63 = vpack.c.bf16 %v2132_v32, %v2131_v34 }
 0x394   : > { %v2140_v61 = vadd.f32 %v4729_v6, %v2116_v24 }
 0x395   : > { %2195 = vst [vmem:[%s4741_s30] sm:$0xff] %v2352_v63 }
 0x396   : > { %v2356_v41 = vpack.c.bf16 %v2140_v61, %v2139_v8 }
 0x398   : > { %2199 = vst [vmem:[%s4741_s30 + $0x20] sm:$0xff] %v2356_v41 }
 0x3b5   : > { %v1925_v31 = vpop.f32.mrb[12].mxu0 }
 0x3b6   : > { %v1991_v36 = vmul.f32 %v4687_v7, %v1925_v31  ;;  %v1927_v58 = vpop.f32.mrb[13].mxu0 }
 0x3b7   : > { %v1992_v40 = vmul.f32 %v4687_v7, %v1927_v58  ;;  %v1929_v37 = vpop.f32.mrb[14].mxu0 }
 0x3b8   : > { %v2015_v30 = vadd.f32 %v4683_v35, %v1991_v36  ;;  %v1999_v22 = vmul.f32 %v4681_v18, %v1929_v37  ;;  %v1931_v20 = vpop.f32.mrb[15].mxu0 }
 0x3b9   : > { %v2016_v50 = vadd.f32 %v4683_v35, %v1992_v40  ;;  %v2000_v3 = vmul.f32 %v4681_v18, %v1931_v20 }
 0x3ba   : > { %v2031_v57 = vadd.f32 %v2015_v30, %v4613_v15  ;;  %v2023_v9 = vadd.f32 %v4691_v0, %v1999_v22 }
 0x3bb   : > { %v2032_v12 = vadd.f32 %v2016_v50, %v4631_v4  ;;  %v2024_v43 = vadd.f32 %v4691_v0, %v2000_v3 }
 0x3bc   : > { %v2055_v53 = vadd.f32 %v4685_v28, %v2031_v57  ;;  %v2039_v39 = vadd.f32 %v2023_v9, %v4620_v13 }
 0x3bd   : > { %v2056_v10 = vadd.f32 %v4685_v28, %v2032_v12  ;;  %v2040_v21 = vadd.f32 %v2024_v43, %v4634_v1  ;;  %v1968_v25 = vpop.f32.mrb[12].mxu1 }
 0x3be   : > { %vm2071_vm4 = vcmp.gt.f32.partialorder %v2055_v53, 0.0  ;;  %v2095_v14 = vmul.f32 %v4705_v5, %v2055_v53  ;;  %v2063_v15 = vadd.f32 %v4689_v55, %v2039_v39  ;;  %v1993_v51 = vmul.f32 %v4687_v7, %v1968_v25  ;;  %v1970_v56 = vpop.f32.mrb[13].mxu1 }
 0x3bf   : > { %vm2072_vm5 = vcmp.gt.f32.partialorder %v2056_v10, 0.0  ;;  %v2096_v4 = vmul.f32 %v4705_v5, %v2056_v10  ;;  %v2064_v54 = vadd.f32 %v4689_v55, %v2040_v21  ;;  %v1994_v13 = vmul.f32 %v4687_v7, %v1970_v56  ;;  %v1972_v42 = vpop.f32.mrb[14].mxu1 }
 0x3c0   : > { %v2111_v33 = vsel %vm2071_vm4, %v2055_v53, %v2095_v14  ;;  %vm2079_vm6 = vcmp.gt.f32.partialorder %v2063_v15, 0.0  ;;  %v2103_v1 = vmul.f32 %v4699_v38, %v2063_v15  ;;  %v2017_v44 = vadd.f32 %v4683_v35, %v1993_v51  ;;  %v1974_v19 = vpop.f32.mrb[15].mxu1 }
 0x3c1   : > { %v2135_v46 = vadd.f32 %v4716_v48, %v2111_v33  ;;  %v2112_v26 = vsel %vm2072_vm5, %v2056_v10, %v2096_v4  ;;  %vm2080_vm7 = vcmp.gt.f32.partialorder %v2064_v54, 0.0  ;;  %v2104_v45 = vmul.f32 %v4699_v38, %v2064_v54 }
 0x3c2   : > { %v2136_v29 = vadd.f32 %v4716_v48, %v2112_v26  ;;  %v2119_v2 = vsel %vm2079_vm6, %v2063_v15, %v2103_v1  ;;  %v2033_v7 = vadd.f32 %v2017_v44, %v4627_v17  ;;  %v2018_v23 = vadd.f32 %v4683_v35, %v1994_v13 }
 0x3c3   : > { %v2143_v62 = vadd.f32 %v4729_v6, %v2119_v2  ;;  %v2120_v59 = vsel %vm2080_vm7, %v2064_v54, %v2104_v45  ;;  %v2001_v47 = vmul.f32 %v4681_v18, %v1972_v42  ;;  %v2002_v27 = vmul.f32 %v4681_v18, %v1974_v19 }
 0x3c4   : > { %v2354_v60 = vpack.c.bf16 %v2136_v29, %v2135_v46  ;;  %v2144_v34 = vadd.f32 %v4729_v6, %v2120_v59  ;;  %v2057_v32 = vadd.f32 %v4685_v28, %v2033_v7  ;;  %v2034_v49 = vadd.f32 %v2018_v23, %v4648_v52 }
 0x3c5   : > { %v2025_v24 = vadd.f32 %v4691_v0, %v2001_v47  ;;  %v2026_v17 = vadd.f32 %v4691_v0, %v2002_v27 }
 0x3c6   : > { %2197 = vst [vmem:[%s4741_s30 + $0x10] sm:$0xff] %v2354_v60  ;;  %v2358_v35 = vpack.c.bf16 %v2144_v34, %v2143_v62  ;;  %vm2073_vm8 = vcmp.gt.f32.partialorder %v2057_v32, 0.0  ;;  %v2097_v8 = vmul.f32 %v4705_v5, %v2057_v32  ;;  %v2058_v63 = vadd.f32 %v4685_v28, %v2034_v49 }
 0x3c7   : > { %v2041_v18 = vadd.f32 %v2025_v24, %v4653_v11  ;;  %v2042_v61 = vadd.f32 %v2026_v17, %v4663_v16 }
 0x3c8   : > { %2201 = vst [vmem:[%s4741_s30 + $0x30] sm:$0xff] %v2358_v35  ;;  %v2113_v41 = vsel %vm2073_vm8, %v2057_v32, %v2097_v8  ;;  %vm2074_vm9 = vcmp.gt.f32.partialorder %v2058_v63, 0.0  ;;  %v2098_v52 = vmul.f32 %v4705_v5, %v2058_v63 }
 0x3c9   : > { %v2137_v0 = vadd.f32 %v4716_v48, %v2113_v41  ;;  %v2065_v31 = vadd.f32 %v4689_v55, %v2041_v18  ;;  %v2066_v36 = vadd.f32 %v4689_v55, %v2042_v61 }
 0x3ca   : > { %v2114_v58 = vsel %vm2074_vm9, %v2058_v63, %v2098_v52 }
 0x3cb   : > { %v2138_v28 = vadd.f32 %v4716_v48, %v2114_v58  ;;  %vm2081_vm10 = vcmp.gt.f32.partialorder %v2065_v31, 0.0  ;;  %v2105_v11 = vmul.f32 %v4699_v38, %v2065_v31  ;;  %vm2082_vm11 = vcmp.gt.f32.partialorder %v2066_v36, 0.0 }
 0x3cc   : > { %v2106_v16 = vmul.f32 %v4699_v38, %v2066_v36 }
 0x3cd   : > { %v2355_v5 = vpack.c.bf16 %v2138_v28, %v2137_v0  ;;  %v2121_v40 = vsel %vm2081_vm10, %v2065_v31, %v2105_v11 }
 0x3ce   : > { %v2145_v37 = vadd.f32 %v4729_v6, %v2121_v40  ;;  %v2122_v30 = vsel %vm2082_vm11, %v2066_v36, %v2106_v16 }
 0x3cf   : > { %2198 = vst [vmem:[%s4741_s30 + $0x18] sm:$0xff] %v2355_v5  ;;  %v2146_v55 = vadd.f32 %v4729_v6, %v2122_v30 }
 0x3d1   : > { %v2359_v38 = vpack.c.bf16 %v2146_v55, %v2145_v37 }
 0x3d3   : > { %2202 = vst [vmem:[%s4741_s30 + $0x38] sm:$0xff] %v2359_v38 }
 0x3d4   : > { %2892 = shalt.err (!%p2889_p11)
}
 0x3d5   : > { %s2893_s16 = scalar_lea.hbm %s4813_s14, 1024  ;;  %s2897_s28 = scalar_lea.hbm %s4866_s6, 2048 }
 0x3d6   : > { %p2894_p13 = scmp.ne.s32.totalorder %s4813_s14, %s2893_s16  ;;  %p2898_p12 = scmp.lt.u32.totalorder %s4813_s14, %s4866_s6 }
 0x3d7   : > { %p2899_p0 = scmp.lt.u32.totalorder %s2897_s28, %s2893_s16  ;;  %p2901_p8 = scmp.lt.u32.totalorder %s2893_s16, %s4813_s14 }
 0x3d8   : > { %p2895_p2 = pnand %p2894_p13, %p5018_p9 }
 0x3d9   : > { %p2900_p3 = por %p2899_p0, %p2898_p12 }
 0x3da   : > { %p2896_p6 = pneg %p2895_p2 }
 0x3db   : > { %p2902_p10 = por %p2901_p8, %p2900_p3 }
 0x3dd   : > { %p2903_p1 = pnand %p2902_p10, %p2896_p6 }
 0x3df   : > { %2906 = shalt.err (!%p2903_p1)
}
 0x3e0   : > { %s2975_s11 = smov 512   ;;  %s2976_s19 = smov 1024  }
 0x3e1   : > { %s2977_s7 = smov 32  }
 0x3e2   : > { %2367 = dma.vmem_to_hbm [thread:$0]  (%p5018_p9), %s4815_s8, 1024, %s4813_s14, %s2204_s25, %s2975_s11, %s2976_s19, %s2977_s7  }
 0x3e3 PF: > { %s2232_s20 = sand.u32 1, %s2937_s21   ;;  %p5019_p4 = scmp.ne.s32.totalorder %s4932_s10, 0 }
 0x3e4   : > { %p5020_p7 = scmp.ge.s32.totalorder %s2949_s24, 2  ;;  %s2233_s29 = scalar_lea.sflag [#allocation4], %s2232_s20 }
 0x3e6   : > { %p2378_p5 = pnand %p5020_p7, %p5019_p4 }
 0x3e8   : > { %2932 = dma.done.wait (!%p2378_p5), %s2233_s29, 1024  }
 0x3e9   : > { %2934 = vsyncadd (!%p2378_p5), %s2233_s29, 4294966272  ;;  %s5021_s13 = sld [smem:[#allocation11_spill]]  ;;  %p20_p11 = scmp.ge.s32.totalorder %s3038_s27, 4  }
 0x3ea   : > { %s5022_s21 = smov %s2941_s22  ;;  %s5023_s22 = smov %s2945_s23 }
 0x3eb   : > { %s5025_s24 = smov %s3038_s27  ;;  %22 = sbr.rel (!%p20_p11) target bundleno = 6 (0x6), region = 93 }
 0x3ef   : > { %s5024_s23 = smov %s5021_s13 }
 0x3f2   :  { %2238 = vsyncpa [#allocation3], 1 }
 0x3f3   :  { %2240 = vsyncpa [#allocation3 + $0x1], 1 }
 0x3f4   :  { %2241 = vsyncpa [#allocation6], 1 }
 0x3f5   :  { %2242 = vsyncpa [#allocation4], 1 }
 0x3f6   :  { %2244 = vsyncpa [#allocation4 + $0x1], 1 }

</bundles_post_ra>
